<compile_context>
chip_gen: v7x
topology: tpu7x:2x2x1
jax: 0.10.0
libtpu: 0.0.40
codegen_flags: <defaults>
</compile_context>

<pallas_src>
import math
import numpy as np
import jax
import jax.numpy as jnp
from jax.experimental import pallas as pl
from jax.experimental.pallas import tpu as pltpu

# ---- small config (original: B=20, S=500, D=300, Q=128, H=600, num_gau=4) ----
B = 2
S = 16            # pad_size
D = 64            # embed / dim_model  (even, for the token-shift chunk)
Q = 64            # query_key_dim
H = 2 * D         # hidden_dim = expansion_factor(2.0) * dim
ROT = 32          # rotary dim = min(32, query_key_dim)
NUM_GAU = 2       # reference uses 4 deep-copied (identically initialized) GAUs
NUM_CLASSES = 2
VOCAB = 50
LN_EPS = 1e-5


def _quantize(t, scale):
    """Emulate (t / scale).clamp(-127,127).to(int8).to(float32) (trunc toward 0).

    A zero scale (e.g. an attention row fully zeroed by the causal mask) would
    give NaN/inf in the naive formula; guard it so the row quantizes to 0.
    """
    safe = jnp.where(scale > 0.0, scale, 1.0)
    return jnp.trunc(jnp.clip(t / safe, -127.0, 127.0))


# --------------------------------------------------------------------------
# Fused GAU stack: grid (batch, layer).  One batch element per step, the
# (S, D) activation stays resident in VMEM scratch across the layer axis.
# --------------------------------------------------------------------------
def gau_stack_kernel(x_ref, lng_ref, lnb_ref, wf_ref, bf_ref, gam_ref, bet_ref,
                     wo_ref, bo_ref, cos_ref, sin_ref, rot_ref, bias_ref,
                     shiftm_ref, passm_ref, causal_ref,
                     o_ref, act_ref):
    layer = pl.program_id(1)

    # Layer 0: pull the input activation block into the resident scratch.
    @pl.when(layer == 0)
    def _():
        act_ref[...] = x_ref[0]

    x = act_ref[...]                       # (S, D), resident across layers
    s, d = x.shape
    h = wo_ref.shape[0]

    # LayerNorm(dim)
    mean = jnp.mean(x, axis=-1, keepdims=True)
    cen = x - mean
    var = jnp.mean(cen * cen, axis=-1, keepdims=True)
    normed = cen * jax.lax.rsqrt(var + LN_EPS) * lng_ref[...] + lnb_ref[...]

    # token shift via precomputed masks:
    #   shift_mask = (lane < D/2) & (row > 0);  pass_mask = (lane >= D/2)
    rolled = pltpu.roll(normed, shift=1, axis=0)      # rolled[i] = normed[i-1]
    normed = rolled * shiftm_ref[...] + normed * passm_ref[...]

    # fused to_hidden + to_qk projection (single MXU pass) + SiLU, then slice
    proj = jnp.dot(normed, wf_ref[...], preferred_element_type=jnp.float32) + bf_ref[...]
    proj = proj * jax.nn.sigmoid(proj)
    v = proj[:, :h]
    gate = proj[:, h:2 * h]
    qk = proj[:, 2 * h:]

    # OffsetScale (2 heads)
    gam = gam_ref[...]
    bet = bet_ref[...]
    q = qk * gam[0:1, :] + bet[0:1, :]
    k = qk * gam[1:2, :] + bet[1:2, :]

    # rotary embedding on the first ROT features: y = x*cos + rotate_half(x)*sin
    # (rotate_half applied via a precomputed signed-permutation matrix on MXU)
    cosf = cos_ref[...]
    sinf = sin_ref[...]
    rmat = rot_ref[...]
    q = q * cosf + jnp.dot(q, rmat, preferred_element_type=jnp.float32) * sinf
    k = k * cosf + jnp.dot(k, rmat, preferred_element_type=jnp.float32) * sinf

    # per-row int8-style quantization of q / k; quantized operands are exact
    # integers in [-127,127] => bf16 cast is bit-exact and runs the MXU at
    # its bf16 rate.
    q_scale = jnp.max(jnp.abs(q), axis=-1, keepdims=True) / 127.0   # (S, 1)
    k_scale = jnp.max(jnp.abs(k), axis=-1, keepdims=True) / 127.0   # (S, 1)
    qq = _quantize(q, q_scale).astype(jnp.bfloat16)
    kq = _quantize(k, k_scale).astype(jnp.bfloat16)

    sim = jax.lax.dot_general(qq, kq, (((1,), (1,)), ((), ())),
                              preferred_element_type=jnp.float32)
    outer_qk = jax.lax.dot_general(q_scale, k_scale, (((1,), (1,)), ((), ())),
                                   preferred_element_type=jnp.float32)
    sim = sim * outer_qk + bias_ref[...]          # T5 relative position bias

    # ReLU^2 attention, causal mask (precomputed 0/1 multiplier)
    attn = jnp.maximum(sim / float(s), 0.0)
    attn = attn * attn
    attn = attn * causal_ref[...]

    # per-row quant of attn (attn >= 0, so no abs needed), per-column quant of v
    a_scale = jnp.max(attn, axis=-1, keepdims=True) / 127.0          # (S, 1)
    v_scale = jnp.max(jnp.abs(v), axis=0, keepdims=True) / 127.0     # (1, H)
    aq = _quantize(attn, a_scale).astype(jnp.bfloat16)
    vq = _quantize(v, v_scale).astype(jnp.bfloat16)

    out = jnp.dot(aq, vq, preferred_element_type=jnp.float32)
    out = out * (a_scale * v_scale)       # outer(attn_row_scale, v_col_scale)

    # gate, output projection, residual
    out = out * gate
    out = jnp.dot(out, wo_ref[...], preferred_element_type=jnp.float32) + bo_ref[...]
    new = out + x

    act_ref[...] = new                    # carry to the next layer

    @pl.when(layer == pl.num_programs(1) - 1)
    def _():
        o_ref[0] = new.astype(o_ref.dtype)


def gau_stack(x, p):
    b, s, d = x.shape
    consts = (p['ln_g'], p['ln_b'], p['w_fused'], p['b_fused'],
              p['gamma'], p['beta'], p['w_o'], p['b_o'],
              p['rope_cos'], p['rope_sin'], p['rot_mat'], p['rel_bias'],
              p['shift_mask'], p['pass_mask'], p['causal_mask'])
    in_specs = [pl.BlockSpec((1, s, d), lambda i, l: (i, 0, 0))]
    in_specs += [pl.BlockSpec(c.shape, lambda i, l: (0, 0)) for c in consts]
    return pl.pallas_call(
        gau_stack_kernel,
        out_shape=jax.ShapeDtypeStruct((b, s, d), jnp.float32),
        grid=(b, NUM_GAU),
        in_specs=in_specs,
        out_specs=pl.BlockSpec((1, s, d), lambda i, l: (i, 0, 0)),
        scratch_shapes=[pltpu.VMEM((s, d), jnp.float32)],
        compiler_params=pltpu.CompilerParams(
            dimension_semantics=("parallel", "arbitrary")),
    )(x, *consts)


# --------------------------------------------------------------------------
# Final classifier: out.view(B, -1) @ W + b   (Linear(pad_size*dim, classes)),
# tiled over the contraction dim with a VMEM accumulator.
# --------------------------------------------------------------------------
def fc_kernel(x_ref, w_ref, b_ref, o_ref, acc_ref):
    @pl.when(pl.program_id(0) == 0)
    def _():
        acc_ref[...] = jnp.zeros_like(acc_ref)
    acc_ref[...] += jnp.dot(x_ref[...], w_ref[...],
                            preferred_element_type=jnp.float32)

    @pl.when(pl.program_id(0) == pl.num_programs(0) - 1)
    def _():
        o_ref[...] = acc_ref[...] + b_ref[...]


def fc_forward(x, w, b):
    m, k = x.shape
    _, n = w.shape
    block_k = 512 if (k % 512 == 0) else k
    return pl.pallas_call(
        fc_kernel,
        out_shape=jax.ShapeDtypeStruct((m, n), jnp.float32),
        grid=(k // block_k,),
        in_specs=[pl.BlockSpec((m, block_k), lambda kk: (0, kk)),
                  pl.BlockSpec((block_k, n), lambda kk: (kk, 0)),
                  pl.BlockSpec((1, n), lambda kk: (0, 0))],
        out_specs=pl.BlockSpec((m, n), lambda kk: (0, 0)),
        scratch_shapes=[pltpu.VMEM((m, n), jnp.float32)],
        compiler_params=pltpu.CompilerParams(dimension_semantics=("arbitrary",)),
    )(x, w, b)


# --------------------------------------------------------------------------
# Precomputed constants (glue)
# --------------------------------------------------------------------------
def make_positional_encoding(s, d):
    pe = np.array([[pos / (10000.0 ** ((i // 2) * 2.0 / d)) for i in range(d)]
                   for pos in range(s)], dtype=np.float64)
    pe[:, 0::2] = np.sin(pe[:, 0::2])
    pe[:, 1::2] = np.cos(pe[:, 1::2])
    return jnp.asarray(pe, dtype=jnp.float32)


def make_rotary(s, q_dim, rot_dim):
    # lucidrains RotaryEmbedding: interleaved-pair rotation of the first rot_dim dims
    inv_freq = 1.0 / (10000.0 ** (np.arange(0, rot_dim, 2, dtype=np.float64) / rot_dim))
    freqs = np.arange(s, dtype=np.float64)[:, None] * inv_freq[None, :]   # (S, rot/2)
    freqs = np.repeat(freqs, 2, axis=-1)                                  # (S, rot)
    cosf = np.ones((s, q_dim))
    sinf = np.zeros((s, q_dim))
    cosf[:, :rot_dim] = np.cos(freqs)
    sinf[:, :rot_dim] = np.sin(freqs)
    rmat = np.zeros((q_dim, q_dim))                                       # rotate_half as x @ R
    for i in range(rot_dim // 2):
        rmat[2 * i + 1, 2 * i] = -1.0    # out[2i]   = -x[2i+1]
        rmat[2 * i, 2 * i + 1] = 1.0     # out[2i+1] =  x[2i]
    return (jnp.asarray(cosf, jnp.float32), jnp.asarray(sinf, jnp.float32),
            jnp.asarray(rmat, jnp.float32))


def make_t5_rel_bias(s, table, scale, num_buckets=32, max_distance=128):
    # causal=True branch of T5RelativePositionBias._relative_position_bucket
    q_pos = np.arange(s)[:, None]
    k_pos = np.arange(s)[None, :]
    n = np.maximum(q_pos - k_pos, 0)               # n = max(-(k - q), 0)
    max_exact = num_buckets // 2
    is_small = n < max_exact
    val_large = max_exact + (np.log(np.maximum(n, 1) / max_exact)
                             / math.log(max_distance / max_exact)
                             * (num_buckets - max_exact)).astype(np.int64)
    val_large = np.minimum(val_large, num_buckets - 1)
    bucket = np.where(is_small, n, val_large)
    values = np.asarray(table)[bucket, 0]          # nn.Embedding(num_buckets, 1)
    return jnp.asarray(values * scale, jnp.float32)


def make_masks(s, d):
    rows = np.arange(s)[:, None]
    lanes = np.arange(d)[None, :]
    shift = ((lanes < d // 2) & (rows > 0)).astype(np.float32)            # (S, D)
    passm = np.broadcast_to(lanes >= d // 2, (s, d)).astype(np.float32)   # (S, D)
    causal = (np.arange(s)[None, :] <= np.arange(s)[:, None]).astype(np.float32)
    return jnp.asarray(shift), jnp.asarray(passm), jnp.asarray(causal)


def init_params(key):
    ks = jax.random.split(key, 8)
    nrm = lambda k, shape, std: std * jax.random.normal(k, shape, jnp.float32)

    emb = nrm(ks[0], (VOCAB, D), 1.0)
    emb = emb.at[VOCAB - 1].set(0.0)               # padding_idx = n_vocab - 1

    # All GAU layers share identical initial weights (reference deep-copies one GAU).
    w_v = nrm(ks[1], (D, H), 0.05)
    w_g = nrm(ks[2], (D, H), 0.05)
    w_qk = nrm(ks[3], (D, Q), 0.05)
    gau = dict(
        ln_g=jnp.ones((1, D), jnp.float32),
        ln_b=jnp.zeros((1, D), jnp.float32),
        w_fused=jnp.concatenate([w_v, w_g, w_qk], axis=1),      # (D, 2H+Q)
        b_fused=jnp.zeros((1, 2 * H + Q), jnp.float32),
        gamma=1.0 + nrm(ks[4], (2, Q), 0.02),
        beta=jnp.zeros((2, Q), jnp.float32),
        w_o=nrm(ks[5], (H, D), 0.05),
        b_o=jnp.zeros((1, D), jnp.float32),
    )
    rel_table = np.asarray(0.02 * jax.random.normal(ks[6], (32, 1), jnp.float32))
    cosf, sinf, rmat = make_rotary(S, Q, ROT)
    shift_mask, pass_mask, causal_mask = make_masks(S, D)
    gau.update(rope_cos=cosf, rope_sin=sinf, rot_mat=rmat,
               rel_bias=make_t5_rel_bias(S, rel_table, Q ** 0.5),
               shift_mask=shift_mask, pass_mask=pass_mask, causal_mask=causal_mask)

    fc_w = nrm(ks[7], (S * D, NUM_CLASSES), 0.02)
    fc_b = jnp.zeros((1, NUM_CLASSES), jnp.float32)
    return dict(emb=emb, pe=make_positional_encoding(S, D),
                gau=gau, fc_w=fc_w, fc_b=fc_b)


@jax.jit
def model_forward(tokens, params):
    out = params['emb'][tokens]                    # embedding gather (glue)
    out = out + params['pe'][None]                 # positional encoding
    # TODO(synk): nn.Dropout layers are treated as inference-mode identity.
    out = gau_stack(out, params['gau'])            # fused Pallas GAU stack
    flat = out.reshape(out.shape[0], -1)           # out.view(B, -1)
    return fc_forward(flat, params['fc_w'], params['fc_b'])   # Pallas fc kernel


if __name__ == "__main__":
    key = jax.random.PRNGKey(0)
    pkey, xkey = jax.random.split(key)
    params = init_params(pkey)
    tokens = jax.random.randint(xkey, (B, S), 0, VOCAB - 1, dtype=jnp.int32)
    logits = model_forward(tokens, params)
    jax.block_until_ready(logits)
    assert logits.shape == (B, NUM_CLASSES)
    print("KERNEL_OK")
</pallas_src>

<mosaic_0001>
module attributes {stable_mosaic.version = 11 : i64} {
  func.func @fc_kernel(%arg0: i32, %arg1: memref<2x512xf32, #tpu.memory_space<vmem>>, %arg2: memref<512x2xf32, #tpu.memory_space<vmem>>, %arg3: memref<1x2xf32, #tpu.memory_space<vmem>>, %arg4: memref<2x2xf32, #tpu.memory_space<vmem>>, %arg5: memref<2x2xf32, #tpu.memory_space<vmem>>) attributes {dimension_semantics = [#tpu.dimension_semantics<arbitrary>], iteration_bounds = array<i64: 2>, scalar_prefetch = 0 : i64, scratch_operands = 1 : i64, tpu.core_type = #tpu.core_type<tc>, window_params = [{transform_indices = @transform_0, window_bounds = array<i64: 2, 512>}, {transform_indices = @transform_1, window_bounds = array<i64: 512, 2>}, {pipeline_mode = #tpu.pipeline_mode<synchronous>, transform_indices = @transform_2, window_bounds = array<i64: 1, 2>}, {pipeline_mode = #tpu.pipeline_mode<synchronous>, transform_indices = @transform_3, window_bounds = array<i64: 2, 2>}]} {
    %c0_i32 = arith.constant 0 : i32
    %0 = arith.cmpi eq, %arg0, %c0_i32 : i32
    %1 = arith.extui %0 : i1 to i32
    %c0_i32_0 = arith.constant 0 : i32
    %2 = arith.cmpi ne, %1, %c0_i32_0 : i32
    scf.if %2 {
      %cst_9 = arith.constant 0.000000e+00 : f32
      %12 = vector.broadcast %cst_9 : f32 to vector<2x2xf32>
      %c0_10 = arith.constant 0 : index
      %c0_11 = arith.constant 0 : index
      %13 = vector.load %arg5[%c0_10, %c0_11] : memref<2x2xf32, #tpu.memory_space<vmem>>, vector<2x2xf32>
      tpu.vector_store %arg5[%c0_10, %c0_11], %12 {strides = array<i32>} : memref<2x2xf32, #tpu.memory_space<vmem>>, vector<2x2xf32>,
    } else {
    }
    %c0 = arith.constant 0 : index
    %c0_1 = arith.constant 0 : index
    %3 = vector.load %arg5[%c0, %c0_1] : memref<2x2xf32, #tpu.memory_space<vmem>>, vector<2x2xf32>
    %c0_2 = arith.constant 0 : index
    %c0_3 = arith.constant 0 : index
    %4 = vector.load %arg1[%c0_2, %c0_3] : memref<2x512xf32, #tpu.memory_space<vmem>>, vector<2x512xf32>
    %c0_4 = arith.constant 0 : index
    %c0_5 = arith.constant 0 : index
    %5 = vector.load %arg2[%c0_4, %c0_5] : memref<512x2xf32, #tpu.memory_space<vmem>>, vector<512x2xf32>
    %cst = arith.constant dense<0.000000e+00> : vector<2x2xf32>
    %6 = tpu.matmul %4, %5, %cst {dimension_numbers = #tpu.dot_dimension_numbers<[1], [0], [0], [1], [0, 0, 1, 1], [], []>} : vector<2x512xf32>, vector<512x2xf32>, vector<2x2xf32> -> vector<2x2xf32>
    %7 = arith.addf %3, %6 : vector<2x2xf32>
    %c0_6 = arith.constant 0 : index
    %c0_7 = arith.constant 0 : index
    %8 = vector.load %arg5[%c0_6, %c0_7] : memref<2x2xf32, #tpu.memory_space<vmem>>, vector<2x2xf32>
    tpu.vector_store %arg5[%c0_6, %c0_7], %7 {strides = array<i32>} : memref<2x2xf32, #tpu.memory_space<vmem>>, vector<2x2xf32>,
    %c1_i32 = arith.constant 1 : i32
    %9 = arith.cmpi eq, %arg0, %c1_i32 : i32
    %10 = arith.extui %9 : i1 to i32
    %c0_i32_8 = arith.constant 0 : i32
    %11 = arith.cmpi ne, %10, %c0_i32_8 : i32
    scf.if %11 {
      %c0_9 = arith.constant 0 : index
      %c0_10 = arith.constant 0 : index
      %12 = vector.load %arg5[%c0_9, %c0_10] : memref<2x2xf32, #tpu.memory_space<vmem>>, vector<2x2xf32>
      %c0_11 = arith.constant 0 : index
      %c0_12 = arith.constant 0 : index
      %13 = vector.load %arg3[%c0_11, %c0_12] : memref<1x2xf32, #tpu.memory_space<vmem>>, vector<1x2xf32>
      %14 = vector.broadcast %13 : vector<1x2xf32> to vector<2x2xf32>
      %15 = arith.addf %12, %14 : vector<2x2xf32>
      %c0_13 = arith.constant 0 : index
      %c0_14 = arith.constant 0 : index
      %16 = vector.load %arg4[%c0_13, %c0_14] : memref<2x2xf32, #tpu.memory_space<vmem>>, vector<2x2xf32>
      tpu.vector_store %arg4[%c0_13, %c0_14], %15 {strides = array<i32>} : memref<2x2xf32, #tpu.memory_space<vmem>>, vector<2x2xf32>,
    } else {
    }
    return
  }
  func.func @transform_0(%arg0: i32) -> (i32, i32) {
    %c0_i32 = arith.constant 0 : i32
    %c0_i32_0 = arith.constant 0 : i32
    return %c0_i32, %arg0 : i32, i32
  }
  func.func @transform_1(%arg0: i32) -> (i32, i32) {
    %c0_i32 = arith.constant 0 : i32
    %c0_i32_0 = arith.constant 0 : i32
    return %arg0, %c0_i32 : i32, i32
  }
  func.func @transform_2(%arg0: i32) -> (i32, i32) {
    %c0_i32 = arith.constant 0 : i32
    %c0_i32_0 = arith.constant 0 : i32
    %c0_i32_1 = arith.constant 0 : i32
    return %c0_i32, %c0_i32_0 : i32, i32
  }
  func.func @transform_3(%arg0: i32) -> (i32, i32) {
    %c0_i32 = arith.constant 0 : i32
    %c0_i32_0 = arith.constant 0 : i32
    %c0_i32_1 = arith.constant 0 : i32
    return %c0_i32, %c0_i32_0 : i32, i32
  }
}

module attributes {stable_mosaic.version = 11 : i64} {
  func.func @gau_stack_kernel(%arg0: i32, %arg1: i32, %arg2: memref<1x16x64xf32, #tpu.memory_space<vmem>>, %arg3: memref<1x64xf32, #tpu.memory_space<vmem>>, %arg4: memref<1x64xf32, #tpu.memory_space<vmem>>, %arg5: memref<64x320xf32, #tpu.memory_space<vmem>>, %arg6: memref<1x320xf32, #tpu.memory_space<vmem>>, %arg7: memref<2x64xf32, #tpu.memory_space<vmem>>, %arg8: memref<2x64xf32, #tpu.memory_space<vmem>>, %arg9: memref<128x64xf32, #tpu.memory_space<vmem>>, %arg10: memref<1x64xf32, #tpu.memory_space<vmem>>, %arg11: memref<16x64xf32, #tpu.memory_space<vmem>>, %arg12: memref<16x64xf32, #tpu.memory_space<vmem>>, %arg13: memref<64x64xf32, #tpu.memory_space<vmem>>, %arg14: memref<16x16xf32, #tpu.memory_space<vmem>>, %arg15: memref<16x64xf32, #tpu.memory_space<vmem>>, %arg16: memref<16x64xf32, #tpu.memory_space<vmem>>, %arg17: memref<16x16xf32, #tpu.memory_space<vmem>>, %arg18: memref<1x16x64xf32, #tpu.memory_space<vmem>>, %arg19: memref<16x64xf32, #tpu.memory_space<vmem>>) attributes {dimension_semantics = [#tpu.dimension_semantics<parallel>, #tpu.dimension_semantics<arbitrary>], iteration_bounds = array<i64: 2, 2>, scalar_prefetch = 0 : i64, scratch_operands = 1 : i64, tpu.core_type = #tpu.core_type<tc>, window_params = [{transform_indices = @transform_0, window_bounds = array<i64: 1, 16, 64>}, {pipeline_mode = #tpu.pipeline_mode<synchronous>, transform_indices = @transform_1, window_bounds = array<i64: 1, 64>}, {pipeline_mode = #tpu.pipeline_mode<synchronous>, transform_indices = @transform_2, window_bounds = array<i64: 1, 64>}, {pipeline_mode = #tpu.pipeline_mode<synchronous>, transform_indices = @transform_3, window_bounds = array<i64: 64, 320>}, {pipeline_mode = #tpu.pipeline_mode<synchronous>, transform_indices = @transform_4, window_bounds = array<i64: 1, 320>}, {pipeline_mode = #tpu.pipeline_mode<synchronous>, transform_indices = @transform_5, window_bounds = array<i64: 2, 64>}, {pipeline_mode = #tpu.pipeline_mode<synchronous>, transform_indices = @transform_6, window_bounds = array<i64: 2, 64>}, {pipeline_mode = #tpu.pipeline_mode<synchronous>, transform_indices = @transform_7, window_bounds = array<i64: 128, 64>}, {pipeline_mode = #tpu.pipeline_mode<synchronous>, transform_indices = @transform_8, window_bounds = array<i64: 1, 64>}, {pipeline_mode = #tpu.pipeline_mode<synchronous>, transform_indices = @transform_9, window_bounds = array<i64: 16, 64>}, {pipeline_mode = #tpu.pipeline_mode<synchronous>, transform_indices = @transform_10, window_bounds = array<i64: 16, 64>}, {pipeline_mode = #tpu.pipeline_mode<synchronous>, transform_indices = @transform_11, window_bounds = array<i64: 64, 64>}, {pipeline_mode = #tpu.pipeline_mode<synchronous>, transform_indices = @transform_12, window_bounds = array<i64: 16, 16>}, {pipeline_mode = #tpu.pipeline_mode<synchronous>, transform_indices = @transform_13, window_bounds = array<i64: 16, 64>}, {pipeline_mode = #tpu.pipeline_mode<synchronous>, transform_indices = @transform_14, window_bounds = array<i64: 16, 64>}, {pipeline_mode = #tpu.pipeline_mode<synchronous>, transform_indices = @transform_15, window_bounds = array<i64: 16, 16>}, {transform_indices = @transform_16, window_bounds = array<i64: 1, 16, 64>}]} {
    %c0_i32 = arith.constant 0 : i32
    %0 = arith.cmpi eq, %arg1, %c0_i32 : i32
    %1 = arith.extui %0 : i1 to i32
    %c0_i32_0 = arith.constant 0 : i32
    %2 = arith.cmpi ne, %1, %c0_i32_0 : i32
    scf.if %2 {
      %c0_78 = arith.constant 0 : index
      %c0_79 = arith.constant 0 : index
      %c0_80 = arith.constant 0 : index
      %182 = vector.load %arg2[%c0_78, %c0_79, %c0_80] : memref<1x16x64xf32, #tpu.memory_space<vmem>>, vector<1x16x64xf32>
      %183 = vector.shape_cast %182 : vector<1x16x64xf32> to vector<16x64xf32>
      %c0_81 = arith.constant 0 : index
      %c0_82 = arith.constant 0 : index
      %184 = vector.load %arg19[%c0_81, %c0_82] : memref<16x64xf32, #tpu.memory_space<vmem>>, vector<16x64xf32>
      tpu.vector_store %arg19[%c0_81, %c0_82], %183 {strides = array<i32>} : memref<16x64xf32, #tpu.memory_space<vmem>>, vector<16x64xf32>,
    } else {
    }
    %c0 = arith.constant 0 : index
    %c0_1 = arith.constant 0 : index
    %3 = vector.load %arg19[%c0, %c0_1] : memref<16x64xf32, #tpu.memory_space<vmem>>, vector<16x64xf32>
    %cst = arith.constant dense<0.000000e+00> : vector<16xf32>
    %4 = vector.multi_reduction <add>, %3, %cst [1] : vector<16x64xf32> to vector<16xf32>
    %5 = vector.shape_cast %4 : vector<16xf32> to vector<16x1xf32>
    %cst_2 = arith.constant 6.400000e+01 : f32
    %6 = vector.broadcast %cst_2 : f32 to vector<16x1xf32>
    %7 = arith.divf %5, %6 : vector<16x1xf32>
    %8 = vector.broadcast %7 : vector<16x1xf32> to vector<16x64xf32>
    %9 = arith.subf %3, %8 : vector<16x64xf32>
    %10 = arith.mulf %9, %9 : vector<16x64xf32>
    %cst_3 = arith.constant dense<0.000000e+00> : vector<16xf32>
    %11 = vector.multi_reduction <add>, %10, %cst_3 [1] : vector<16x64xf32> to vector<16xf32>
    %12 = vector.shape_cast %11 : vector<16xf32> to vector<16x1xf32>
    %cst_4 = arith.constant 6.400000e+01 : f32
    %13 = vector.broadcast %cst_4 : f32 to vector<16x1xf32>
    %14 = arith.divf %12, %13 : vector<16x1xf32>
    %cst_5 = arith.constant 9.99999974E-6 : f32
    %15 = vector.broadcast %cst_5 : f32 to vector<16x1xf32>
    %16 = arith.addf %14, %15 : vector<16x1xf32>
    %17 = math.rsqrt %16 : vector<16x1xf32>
    %18 = vector.broadcast %17 : vector<16x1xf32> to vector<16x64xf32>
    %19 = arith.mulf %9, %18 : vector<16x64xf32>
    %c0_6 = arith.constant 0 : index
    %c0_7 = arith.constant 0 : index
    %20 = vector.load %arg3[%c0_6, %c0_7] : memref<1x64xf32, #tpu.memory_space<vmem>>, vector<1x64xf32>
    %21 = vector.broadcast %20 : vector<1x64xf32> to vector<16x64xf32>
    %22 = arith.mulf %19, %21 : vector<16x64xf32>
    %c0_8 = arith.constant 0 : index
    %c0_9 = arith.constant 0 : index
    %23 = vector.load %arg4[%c0_8, %c0_9] : memref<1x64xf32, #tpu.memory_space<vmem>>, vector<1x64xf32>
    %24 = vector.broadcast %23 : vector<1x64xf32> to vector<16x64xf32>
    %25 = arith.addf %22, %24 : vector<16x64xf32>
    %c1_i32 = arith.constant 1 : i32
    %26 = tpu.dynamic_rotate %25 by %c1_i32 dim 0 : vector<16x64xf32>, i32 -> vector<16x64xf32>
    %c0_10 = arith.constant 0 : index
    %c0_11 = arith.constant 0 : index
    %27 = vector.load %arg15[%c0_10, %c0_11] : memref<16x64xf32, #tpu.memory_space<vmem>>, vector<16x64xf32>
    %28 = arith.mulf %26, %27 : vector<16x64xf32>
    %c0_12 = arith.constant 0 : index
    %c0_13 = arith.constant 0 : index
    %29 = vector.load %arg16[%c0_12, %c0_13] : memref<16x64xf32, #tpu.memory_space<vmem>>, vector<16x64xf32>
    %30 = arith.mulf %25, %29 : vector<16x64xf32>
    %31 = arith.addf %28, %30 : vector<16x64xf32>
    %c0_14 = arith.constant 0 : index
    %c0_15 = arith.constant 0 : index
    %32 = vector.load %arg5[%c0_14, %c0_15] : memref<64x320xf32, #tpu.memory_space<vmem>>, vector<64x320xf32>
    %cst_16 = arith.constant dense<0.000000e+00> : vector<16x320xf32>
    %33 = tpu.matmul %31, %32, %cst_16 {dimension_numbers = #tpu.dot_dimension_numbers<[1], [0], [0], [1], [0, 0, 1, 1], [], []>} : vector<16x64xf32>, vector<64x320xf32>, vector<16x320xf32> -> vector<16x320xf32>
    %c0_17 = arith.constant 0 : index
    %c0_18 = arith.constant 0 : index
    %34 = vector.load %arg6[%c0_17, %c0_18] : memref<1x320xf32, #tpu.memory_space<vmem>>, vector<1x320xf32>
    %35 = vector.broadcast %34 : vector<1x320xf32> to vector<16x320xf32>
    %36 = arith.addf %33, %35 : vector<16x320xf32>
    %37 = arith.negf %36 : vector<16x320xf32>
    %38 = math.exp %37 : vector<16x320xf32>
    %cst_19 = arith.constant 1.000000e+00 : f32
    %39 = vector.broadcast %cst_19 : f32 to vector<16x320xf32>
    %40 = arith.addf %39, %38 : vector<16x320xf32>
    %41 = arith.divf %39, %40 : vector<16x320xf32>
    %42 = arith.mulf %36, %41 : vector<16x320xf32>
    %43 = vector.extract_strided_slice %42 {offsets = [0, 0], sizes = [16, 128], strides = [1, 1]} : vector<16x320xf32> to vector<16x128xf32>
    %44 = vector.extract_strided_slice %42 {offsets = [0, 128], sizes = [16, 128], strides = [1, 1]} : vector<16x320xf32> to vector<16x128xf32>
    %45 = vector.extract_strided_slice %42 {offsets = [0, 256], sizes = [16, 64], strides = [1, 1]} : vector<16x320xf32> to vector<16x64xf32>
    %c0_20 = arith.constant 0 : index
    %c0_21 = arith.constant 0 : index
    %46 = vector.load %arg7[%c0_20, %c0_21] : memref<2x64xf32, #tpu.memory_space<vmem>>, vector<2x64xf32>
    %c0_22 = arith.constant 0 : index
    %c0_23 = arith.constant 0 : index
    %47 = vector.load %arg8[%c0_22, %c0_23] : memref<2x64xf32, #tpu.memory_space<vmem>>, vector<2x64xf32>
    %48 = vector.extract_strided_slice %46 {offsets = [0, 0], sizes = [1, 64], strides = [1, 1]} : vector<2x64xf32> to vector<1x64xf32>
    %49 = vector.broadcast %48 : vector<1x64xf32> to vector<16x64xf32>
    %50 = arith.mulf %45, %49 : vector<16x64xf32>
    %51 = vector.extract_strided_slice %47 {offsets = [0, 0], sizes = [1, 64], strides = [1, 1]} : vector<2x64xf32> to vector<1x64xf32>
    %52 = vector.broadcast %51 : vector<1x64xf32> to vector<16x64xf32>
    %53 = arith.addf %50, %52 : vector<16x64xf32>
    %54 = vector.extract_strided_slice %46 {offsets = [1, 0], sizes = [1, 64], strides = [1, 1]} : vector<2x64xf32> to vector<1x64xf32>
    %55 = vector.broadcast %54 : vector<1x64xf32> to vector<16x64xf32>
    %56 = arith.mulf %45, %55 : vector<16x64xf32>
    %57 = vector.extract_strided_slice %47 {offsets = [1, 0], sizes = [1, 64], strides = [1, 1]} : vector<2x64xf32> to vector<1x64xf32>
    %58 = vector.broadcast %57 : vector<1x64xf32> to vector<16x64xf32>
    %59 = arith.addf %56, %58 : vector<16x64xf32>
    %c0_24 = arith.constant 0 : index
    %c0_25 = arith.constant 0 : index
    %60 = vector.load %arg11[%c0_24, %c0_25] : memref<16x64xf32, #tpu.memory_space<vmem>>, vector<16x64xf32>
    %c0_26 = arith.constant 0 : index
    %c0_27 = arith.constant 0 : index
    %61 = vector.load %arg12[%c0_26, %c0_27] : memref<16x64xf32, #tpu.memory_space<vmem>>, vector<16x64xf32>
    %c0_28 = arith.constant 0 : index
    %c0_29 = arith.constant 0 : index
    %62 = vector.load %arg13[%c0_28, %c0_29] : memref<64x64xf32, #tpu.memory_space<vmem>>, vector<64x64xf32>
    %63 = arith.mulf %53, %60 : vector<16x64xf32>
    %cst_30 = arith.constant dense<0.000000e+00> : vector<16x64xf32>
    %64 = tpu.matmul %53, %62, %cst_30 {dimension_numbers = #tpu.dot_dimension_numbers<[1], [0], [0], [1], [0, 0, 1, 1], [], []>} : vector<16x64xf32>, vector<64x64xf32>, vector<16x64xf32> -> vector<16x64xf32>
    %65 = arith.mulf %64, %61 : vector<16x64xf32>
    %66 = arith.addf %63, %65 : vector<16x64xf32>
    %67 = arith.mulf %59, %60 : vector<16x64xf32>
    %cst_31 = arith.constant dense<0.000000e+00> : vector<16x64xf32>
    %68 = tpu.matmul %59, %62, %cst_31 {dimension_numbers = #tpu.dot_dimension_numbers<[1], [0], [0], [1], [0, 0, 1, 1], [], []>} : vector<16x64xf32>, vector<64x64xf32>, vector<16x64xf32> -> vector<16x64xf32>
    %69 = arith.mulf %68, %61 : vector<16x64xf32>
    %70 = arith.addf %67, %69 : vector<16x64xf32>
    %71 = math.absf %66 : vector<16x64xf32>
    %cst_32 = arith.constant dense<0xFF800000> : vector<16xf32>
    %72 = vector.multi_reduction <maximumf>, %71, %cst_32 [1] : vector<16x64xf32> to vector<16xf32>
    %73 = vector.shape_cast %72 : vector<16xf32> to vector<16x1xf32>
    %cst_33 = arith.constant 1.270000e+02 : f32
    %74 = vector.broadcast %cst_33 : f32 to vector<16x1xf32>
    %75 = arith.divf %73, %74 : vector<16x1xf32>
    %76 = math.absf %70 : vector<16x64xf32>
    %cst_34 = arith.constant dense<0xFF800000> : vector<16xf32>
    %77 = vector.multi_reduction <maximumf>, %76, %cst_34 [1] : vector<16x64xf32> to vector<16xf32>
    %78 = vector.shape_cast %77 : vector<16xf32> to vector<16x1xf32>
    %cst_35 = arith.constant 1.270000e+02 : f32
    %79 = vector.broadcast %cst_35 : f32 to vector<16x1xf32>
    %80 = arith.divf %78, %79 : vector<16x1xf32>
    %cst_36 = arith.constant 0.000000e+00 : f32
    %81 = vector.broadcast %cst_36 : f32 to vector<16x1xf32>
    %82 = arith.cmpf ogt, %75, %81 : vector<16x1xf32>
    %cst_37 = arith.constant 1.000000e+00 : f32
    %83 = vector.broadcast %cst_37 : f32 to vector<16x1xf32>
    %84 = arith.select %82, %75, %83 : vector<16x1xi1>, vector<16x1xf32>
    %85 = vector.broadcast %84 : vector<16x1xf32> to vector<16x64xf32>
    %86 = arith.divf %66, %85 : vector<16x64xf32>
    %cst_38 = arith.constant -1.270000e+02 : f32
    %cst_39 = arith.constant 1.270000e+02 : f32
    %87 = vector.broadcast %cst_38 : f32 to vector<16x64xf32>
    %88 = arith.maximumf %87, %86 : vector<16x64xf32>
    %89 = vector.broadcast %cst_39 : f32 to vector<16x64xf32>
    %90 = arith.minimumf %89, %88 : vector<16x64xf32>
    %cst_40 = arith.constant 0.000000e+00 : f32
    %91 = vector.broadcast %cst_40 : f32 to vector<16x64xf32>
    %92 = arith.cmpf olt, %90, %91 : vector<16x64xf32>
    %93 = math.ceil %90 : vector<16x64xf32>
    %94 = math.floor %90 : vector<16x64xf32>
    %95 = arith.select %92, %93, %94 : vector<16x64xi1>, vector<16x64xf32>
    %96 = arith.truncf %95 : vector<16x64xf32> to vector<16x64xbf16>
    %cst_41 = arith.constant 0.000000e+00 : f32
    %97 = vector.broadcast %cst_41 : f32 to vector<16x1xf32>
    %98 = arith.cmpf ogt, %80, %97 : vector<16x1xf32>
    %cst_42 = arith.constant 1.000000e+00 : f32
    %99 = vector.broadcast %cst_42 : f32 to vector<16x1xf32>
    %100 = arith.select %98, %80, %99 : vector<16x1xi1>, vector<16x1xf32>
    %101 = vector.broadcast %100 : vector<16x1xf32> to vector<16x64xf32>
    %102 = arith.divf %70, %101 : vector<16x64xf32>
    %cst_43 = arith.constant -1.270000e+02 : f32
    %cst_44 = arith.constant 1.270000e+02 : f32
    %103 = vector.broadcast %cst_43 : f32 to vector<16x64xf32>
    %104 = arith.maximumf %103, %102 : vector<16x64xf32>
    %105 = vector.broadcast %cst_44 : f32 to vector<16x64xf32>
    %106 = arith.minimumf %105, %104 : vector<16x64xf32>
    %cst_45 = arith.constant 0.000000e+00 : f32
    %107 = vector.broadcast %cst_45 : f32 to vector<16x64xf32>
    %108 = arith.cmpf olt, %106, %107 : vector<16x64xf32>
    %109 = math.ceil %106 : vector<16x64xf32>
    %110 = math.floor %106 : vector<16x64xf32>
    %111 = arith.select %108, %109, %110 : vector<16x64xi1>, vector<16x64xf32>
    %112 = arith.truncf %111 : vector<16x64xf32> to vector<16x64xbf16>
    %cst_46 = arith.constant dense<0.000000e+00> : vector<16x16xf32>
    %113 = tpu.matmul %96, %112, %cst_46 {dimension_numbers = #tpu.dot_dimension_numbers<[1], [1], [0], [0], [0, 0, 1, 0], [], []>} : vector<16x64xbf16>, vector<16x64xbf16>, vector<16x16xf32> -> vector<16x16xf32>
    %cst_47 = arith.constant dense<0.000000e+00> : vector<16x16xf32>
    %114 = tpu.matmul %75, %80, %cst_47 {dimension_numbers = #tpu.dot_dimension_numbers<[1], [1], [0], [0], [0, 0, 1, 0], [], []>} : vector<16x1xf32>, vector<16x1xf32>, vector<16x16xf32> -> vector<16x16xf32>
    %115 = arith.mulf %113, %114 : vector<16x16xf32>
    %c0_48 = arith.constant 0 : index
    %c0_49 = arith.constant 0 : index
    %116 = vector.load %arg14[%c0_48, %c0_49] : memref<16x16xf32, #tpu.memory_space<vmem>>, vector<16x16xf32>
    %117 = arith.addf %115, %116 : vector<16x16xf32>
    %cst_50 = arith.constant 1.600000e+01 : f32
    %118 = vector.broadcast %cst_50 : f32 to vector<16x16xf32>
    %119 = arith.divf %117, %118 : vector<16x16xf32>
    %cst_51 = arith.constant 0.000000e+00 : f32
    %120 = vector.broadcast %cst_51 : f32 to vector<16x16xf32>
    %121 = arith.maximumf %119, %120 : vector<16x16xf32>
    %122 = arith.mulf %121, %121 : vector<16x16xf32>
    %c0_52 = arith.constant 0 : index
    %c0_53 = arith.constant 0 : index
    %123 = vector.load %arg17[%c0_52, %c0_53] : memref<16x16xf32, #tpu.memory_space<vmem>>, vector<16x16xf32>
    %124 = arith.mulf %122, %123 : vector<16x16xf32>
    %cst_54 = arith.constant dense<0xFF800000> : vector<16xf32>
    %125 = vector.multi_reduction <maximumf>, %124, %cst_54 [1] : vector<16x16xf32> to vector<16xf32>
    %126 = vector.shape_cast %125 : vector<16xf32> to vector<16x1xf32>
    %cst_55 = arith.constant 1.270000e+02 : f32
    %127 = vector.broadcast %cst_55 : f32 to vector<16x1xf32>
    %128 = arith.divf %126, %127 : vector<16x1xf32>
    %129 = math.absf %43 : vector<16x128xf32>
    %cst_56 = arith.constant dense<0xFF800000> : vector<128xf32>
    %130 = vector.multi_reduction <maximumf>, %129, %cst_56 [0] : vector<16x128xf32> to vector<128xf32>
    %131 = vector.shape_cast %130 : vector<128xf32> to vector<1x128xf32>
    %cst_57 = arith.constant 1.270000e+02 : f32
    %132 = vector.broadcast %cst_57 : f32 to vector<1x128xf32>
    %133 = arith.divf %131, %132 : vector<1x128xf32>
    %cst_58 = arith.constant 0.000000e+00 : f32
    %134 = vector.broadcast %cst_58 : f32 to vector<16x1xf32>
    %135 = arith.cmpf ogt, %128, %134 : vector<16x1xf32>
    %cst_59 = arith.constant 1.000000e+00 : f32
    %136 = vector.broadcast %cst_59 : f32 to vector<16x1xf32>
    %137 = arith.select %135, %128, %136 : vector<16x1xi1>, vector<16x1xf32>
    %138 = vector.broadcast %137 : vector<16x1xf32> to vector<16x16xf32>
    %139 = arith.divf %124, %138 : vector<16x16xf32>
    %cst_60 = arith.constant -1.270000e+02 : f32
    %cst_61 = arith.constant 1.270000e+02 : f32
    %140 = vector.broadcast %cst_60 : f32 to vector<16x16xf32>
    %141 = arith.maximumf %140, %139 : vector<16x16xf32>
    %142 = vector.broadcast %cst_61 : f32 to vector<16x16xf32>
    %143 = arith.minimumf %142, %141 : vector<16x16xf32>
    %cst_62 = arith.constant 0.000000e+00 : f32
    %144 = vector.broadcast %cst_62 : f32 to vector<16x16xf32>
    %145 = arith.cmpf olt, %143, %144 : vector<16x16xf32>
    %146 = math.ceil %143 : vector<16x16xf32>
    %147 = math.floor %143 : vector<16x16xf32>
    %148 = arith.select %145, %146, %147 : vector<16x16xi1>, vector<16x16xf32>
    %149 = arith.truncf %148 : vector<16x16xf32> to vector<16x16xbf16>
    %cst_63 = arith.constant 0.000000e+00 : f32
    %150 = vector.broadcast %cst_63 : f32 to vector<1x128xf32>
    %151 = arith.cmpf ogt, %133, %150 : vector<1x128xf32>
    %cst_64 = arith.constant 1.000000e+00 : f32
    %152 = vector.broadcast %cst_64 : f32 to vector<1x128xf32>
    %153 = arith.select %151, %133, %152 : vector<1x128xi1>, vector<1x128xf32>
    %154 = vector.broadcast %153 : vector<1x128xf32> to vector<16x128xf32>
    %155 = arith.divf %43, %154 : vector<16x128xf32>
    %cst_65 = arith.constant -1.270000e+02 : f32
    %cst_66 = arith.constant 1.270000e+02 : f32
    %156 = vector.broadcast %cst_65 : f32 to vector<16x128xf32>
    %157 = arith.maximumf %156, %155 : vector<16x128xf32>
    %158 = vector.broadcast %cst_66 : f32 to vector<16x128xf32>
    %159 = arith.minimumf %158, %157 : vector<16x128xf32>
    %cst_67 = arith.constant 0.000000e+00 : f32
    %160 = vector.broadcast %cst_67 : f32 to vector<16x128xf32>
    %161 = arith.cmpf olt, %159, %160 : vector<16x128xf32>
    %162 = math.ceil %159 : vector<16x128xf32>
    %163 = math.floor %159 : vector<16x128xf32>
    %164 = arith.select %161, %162, %163 : vector<16x128xi1>, vector<16x128xf32>
    %165 = arith.truncf %164 : vector<16x128xf32> to vector<16x128xbf16>
    %cst_68 = arith.constant dense<0.000000e+00> : vector<16x128xf32>
    %166 = tpu.matmul %149, %165, %cst_68 {dimension_numbers = #tpu.dot_dimension_numbers<[1], [0], [0], [1], [0, 0, 1, 1], [], []>} : vector<16x16xbf16>, vector<16x128xbf16>, vector<16x128xf32> -> vector<16x128xf32>
    %167 = vector.broadcast %128 : vector<16x1xf32> to vector<16x128xf32>
    %168 = vector.broadcast %133 : vector<1x128xf32> to vector<16x128xf32>
    %169 = arith.mulf %167, %168 : vector<16x128xf32>
    %170 = arith.mulf %166, %169 : vector<16x128xf32>
    %171 = arith.mulf %170, %44 : vector<16x128xf32>
    %c0_69 = arith.constant 0 : index
    %c0_70 = arith.constant 0 : index
    %172 = vector.load %arg9[%c0_69, %c0_70] : memref<128x64xf32, #tpu.memory_space<vmem>>, vector<128x64xf32>
    %cst_71 = arith.constant dense<0.000000e+00> : vector<16x64xf32>
    %173 = tpu.matmul %171, %172, %cst_71 {dimension_numbers = #tpu.dot_dimension_numbers<[1], [0], [0], [1], [0, 0, 1, 1], [], []>} : vector<16x128xf32>, vector<128x64xf32>, vector<16x64xf32> -> vector<16x64xf32>
    %c0_72 = arith.constant 0 : index
    %c0_73 = arith.constant 0 : index
    %174 = vector.load %arg10[%c0_72, %c0_73] : memref<1x64xf32, #tpu.memory_space<vmem>>, vector<1x64xf32>
    %175 = vector.broadcast %174 : vector<1x64xf32> to vector<16x64xf32>
    %176 = arith.addf %173, %175 : vector<16x64xf32>
    %177 = arith.addf %176, %3 : vector<16x64xf32>
    %c0_74 = arith.constant 0 : index
    %c0_75 = arith.constant 0 : index
    %178 = vector.load %arg19[%c0_74, %c0_75] : memref<16x64xf32, #tpu.memory_space<vmem>>, vector<16x64xf32>
    tpu.vector_store %arg19[%c0_74, %c0_75], %177 {strides = array<i32>} : memref<16x64xf32, #tpu.memory_space<vmem>>, vector<16x64xf32>,
    %c1_i32_76 = arith.constant 1 : i32
    %179 = arith.cmpi eq, %arg1, %c1_i32_76 : i32
    %180 = arith.extui %179 : i1 to i32
    %c0_i32_77 = arith.constant 0 : i32
    %181 = arith.cmpi ne, %180, %c0_i32_77 : i32
    scf.if %181 {
      %c0_78 = arith.constant 0 : index
      %c0_79 = arith.constant 0 : index
      %c0_80 = arith.constant 0 : index
      %182 = vector.load %arg18[%c0_78, %c0_79, %c0_80] : memref<1x16x64xf32, #tpu.memory_space<vmem>>, vector<1x16x64xf32>
      %183 = vector.shape_cast %182 : vector<1x16x64xf32> to vector<16x64xf32>
      %184 = vector.shape_cast %177 : vector<16x64xf32> to vector<1x16x64xf32>
      tpu.vector_store %arg18[%c0_78, %c0_79, %c0_80], %184 {strides = array<i32>} : memref<1x16x64xf32, #tpu.memory_space<vmem>>, vector<1x16x64xf32>,
    } else {
    }
    return
  }
  func.func @transform_0(%arg0: i32, %arg1: i32) -> (i32, i32, i32) {
    %c0_i32 = arith.constant 0 : i32
    %c0_i32_0 = arith.constant 0 : i32
    %c0_i32_1 = arith.constant 0 : i32
    return %arg0, %c0_i32, %c0_i32_0 : i32, i32, i32
  }
  func.func @transform_1(%arg0: i32, %arg1: i32) -> (i32, i32) {
    %c0_i32 = arith.constant 0 : i32
    %c0_i32_0 = arith.constant 0 : i32
    %c0_i32_1 = arith.constant 0 : i32
    return %c0_i32, %c0_i32_0 : i32, i32
  }
  func.func @transform_2(%arg0: i32, %arg1: i32) -> (i32, i32) {
    %c0_i32 = arith.constant 0 : i32
    %c0_i32_0 = arith.constant 0 : i32
    %c0_i32_1 = arith.constant 0 : i32
    return %c0_i32, %c0_i32_0 : i32, i32
  }
  func.func @transform_3(%arg0: i32, %arg1: i32) -> (i32, i32) {
    %c0_i32 = arith.constant 0 : i32
    %c0_i32_0 = arith.constant 0 : i32
    %c0_i32_1 = arith.constant 0 : i32
    return %c0_i32, %c0_i32_0 : i32, i32
  }
  func.func @transform_4(%arg0: i32, %arg1: i32) -> (i32, i32) {
    %c0_i32 = arith.constant 0 : i32
    %c0_i32_0 = arith.constant 0 : i32
    %c0_i32_1 = arith.constant 0 : i32
    return %c0_i32, %c0_i32_0 : i32, i32
  }
  func.func @transform_5(%arg0: i32, %arg1: i32) -> (i32, i32) {
    %c0_i32 = arith.constant 0 : i32
    %c0_i32_0 = arith.constant 0 : i32
    %c0_i32_1 = arith.constant 0 : i32
    return %c0_i32, %c0_i32_0 : i32, i32
  }
  func.func @transform_6(%arg0: i32, %arg1: i32) -> (i32, i32) {
    %c0_i32 = arith.constant 0 : i32
    %c0_i32_0 = arith.constant 0 : i32
    %c0_i32_1 = arith.constant 0 : i32
    return %c0_i32, %c0_i32_0 : i32, i32
  }
  func.func @transform_7(%arg0: i32, %arg1: i32) -> (i32, i32) {
    %c0_i32 = arith.constant 0 : i32
    %c0_i32_0 = arith.constant 0 : i32
    %c0_i32_1 = arith.constant 0 : i32
    return %c0_i32, %c0_i32_0 : i32, i32
  }
  func.func @transform_8(%arg0: i32, %arg1: i32) -> (i32, i32) {
    %c0_i32 = arith.constant 0 : i32
    %c0_i32_0 = arith.constant 0 : i32
    %c0_i32_1 = arith.constant 0 : i32
    return %c0_i32, %c0_i32_0 : i32, i32
  }
  func.func @transform_9(%arg0: i32, %arg1: i32) -> (i32, i32) {
    %c0_i32 = arith.constant 0 : i32
    %c0_i32_0 = arith.constant 0 : i32
    %c0_i32_1 = arith.constant 0 : i32
    return %c0_i32, %c0_i32_0 : i32, i32
  }
  func.func @transform_10(%arg0: i32, %arg1: i32) -> (i32, i32) {
    %c0_i32 = arith.constant 0 : i32
    %c0_i32_0 = arith.constant 0 : i32
    %c0_i32_1 = arith.constant 0 : i32
    return %c0_i32, %c0_i32_0 : i32, i32
  }
  func.func @transform_11(%arg0: i32, %arg1: i32) -> (i32, i32) {
    %c0_i32 = arith.constant 0 : i32
    %c0_i32_0 = arith.constant 0 : i32
    %c0_i32_1 = arith.constant 0 : i32
    return %c0_i32, %c0_i32_0 : i32, i32
  }
  func.func @transform_12(%arg0: i32, %arg1: i32) -> (i32, i32) {
    %c0_i32 = arith.constant 0 : i32
    %c0_i32_0 = arith.constant 0 : i32
    %c0_i32_1 = arith.constant 0 : i32
    return %c0_i32, %c0_i32_0 : i32, i32
  }
  func.func @transform_13(%arg0: i32, %arg1: i32) -> (i32, i32) {
    %c0_i32 = arith.constant 0 : i32
    %c0_i32_0 = arith.constant 0 : i32
    %c0_i32_1 = arith.constant 0 : i32
    return %c0_i32, %c0_i32_0 : i32, i32
  }
  func.func @transform_14(%arg0: i32, %arg1: i32) -> (i32, i32) {
    %c0_i32 = arith.constant 0 : i32
    %c0_i32_0 = arith.constant 0 : i32
    %c0_i32_1 = arith.constant 0 : i32
    return %c0_i32, %c0_i32_0 : i32, i32
  }
  func.func @transform_15(%arg0: i32, %arg1: i32) -> (i32, i32) {
    %c0_i32 = arith.constant 0 : i32
    %c0_i32_0 = arith.constant 0 : i32
    %c0_i32_1 = arith.constant 0 : i32
    return %c0_i32, %c0_i32_0 : i32, i32
  }
  func.func @transform_16(%arg0: i32, %arg1: i32) -> (i32, i32, i32) {
    %c0_i32 = arith.constant 0 : i32
    %c0_i32_0 = arith.constant 0 : i32
    %c0_i32_1 = arith.constant 0 : i32
    return %arg0, %c0_i32, %c0_i32_0 : i32, i32, i32
  }
}

</mosaic_0001>

<bundles_post_ra>
// kernel: model_forward.3
= control target key start
LH: loop header
LB: loop body
LE: loop exit
PB: predicated region body
PF: predicated region fallthrough
CT: control target
= control target key end

     0   :  { %8 = vsyncpa [#allocation4], 0  ;;  %s718_s12 = smov 0   ;;  %s836_s0 = inlined_call_operand.vmem [shape: f32[2,1024], index: 0, kind: input, shape index: {}]   ;;  %s837_s1 = inlined_call_operand.vmem [shape: f32[1024,2], index: 1, kind: input, shape index: {}]   ;;  %s838_s2 = inlined_call_operand.vmem [shape: f32[1,2], index: 2, kind: input, shape index: {}]   ;;  %s839_s3 = inlined_call_operand.hbm [shape: f32[2,2], index: 3, kind: output, shape index: {}]  }
   0x1 LB: > { %s724_s13 = sadd.s32 4294967295, %s693_s12   ;;  %p493_p0 = scmp.ge.s32.totalorder %s693_s12, 1  ;;  %s693_s12 = sphi %s718_s12, %s14_s12  }
   0x2   : > { %p145_p1 = scmp.lt.s32.totalorder %s693_s12, 3 }
   0x4   : > { %p146_p2 = pnand %p493_p0, %p145_p1 }
   0x5   : > { %s494_s14 = sshll.u32 (!%p146_p2), %s724_s13, 2  ;;  %s496_s15 = sshll.u32 (!%p146_p2), %s724_s13, 6 }
   0x6   : > { %149 = sbr.rel (%p146_p2) target bundleno = 315 (0x13b), region = 32  ;;  %p170_p3 = scmp.lt.s32.totalorder (!%p146_p2), %s494_s14, 7 }
   0x7   : > { %p176_p4 = scmp.lt.s32.totalorder (!%p146_p2), %s496_s15, 127  ;;  %p498_p5 = scmp.ne.s32.totalorder (!%p146_p2), %s724_s13, 0 }
   0xd   : > { %s841_s14 = smov (!%p170_p3, %s494_s14), 7  ;;  %s843_s15 = smov (!%p176_p4, %s496_s15), 127 }
   0xe   : > { %s495_s16 = sshll.u32 %s841_s14, 1  ;;  %s497_s20 = sshll.u32 %s843_s15, 3  ;;  %vm185_vm0 = vcmask (!%p498_p5), 9216   ;;  %v695_v0 = vmov (!%p498_p5), 0.0  }
   0xf   : > { %s733_s19 = scalar_lea.vmem %s836_s0, %s495_s16  ;;  %s738_s23 = scalar_lea.vmem %s837_s1, %s497_s20  ;;  %186 = vst.msk [vmem:[#allocation2] sm:$0x3] (!%p498_p5), %vm185_vm0, %v695_v0 }
  0x10   : > { %184 = sbr.rel (%p498_p5) target bundleno = 23 (0x17), region = 36 }
  0x17 PF: > { %v205_v1 = vld [vmem:[%s738_s23 + $0x80] sm:$0xff]  ;;  %v206_v2 = vld [vmem:[%s738_s23 + $0x88] sm:$0xff]  ;;  %v207_v12 = vld [vmem:[%s738_s23 + $0x90] sm:$0xff]  ;;  %v696_v48 = vmov 1983009808   ;;  %v258_v50 = vlaneseq  ;;  %vm416_vm1 = vcmask 9216  }
  0x18   : > { %v237_v3 = vld [vmem:[%s738_s23 + $0x180] sm:$0xff]  ;;  %v575_v4 = vpack.c.bf16 %v206_v2, %v205_v1  ;;  %v238_v5 = vld [vmem:[%s738_s23 + $0x188] sm:$0xff]  ;;  %v208_v14 = vld [vmem:[%s738_s23 + $0x98] sm:$0xff]  ;;  %v256_v49 = vunpack.c.l.s4 %v696_v48  ;;  %p499_p6 = scmp.ne.s32.totalorder %s724_s13, 1 }
  0x19   : > { %v189_v6 = vld [vmem:[%s738_s23] sm:$0xff]  ;;  %v190_v7 = vld [vmem:[%s738_s23 + $0x8] sm:$0xff]  ;;  %v607_v8 = vpack.c.bf16 %v238_v5, %v237_v3  ;;  %v239_v15 = vld [vmem:[%s738_s23 + $0x190] sm:$0xff]  ;;  %v579_v17 = vpack.c.bf16 %v208_v14, %v207_v12  ;;  %v259_v1 = vshrl.u32 %v258_v50, 7 }
  0x1a   : > { %v577_v9 = vpack.c.bf16 %v190_v7, %v189_v6  ;;  %v221_v10 = vld [vmem:[%s738_s23 + $0x100] sm:$0xff]  ;;  %v222_v11 = vld [vmem:[%s738_s23 + $0x108] sm:$0xff]  ;;  %576 = vmatprep.subr.bf16.mxu0 %v575_v4  ;;  %v240_v16 = vld [vmem:[%s738_s23 + $0x198] sm:$0xff]  ;;  %v257_v0 = vunpack.c.0.s8 %v256_v49 }
  0x1b   : > { %v609_v13 = vpack.c.bf16 %v222_v11, %v221_v10  ;;  %608 = vmatprep.subr.bf16.mxu1 %v607_v8  ;;  %v611_v18 = vpack.c.bf16 %v240_v16, %v239_v15  ;;  %v191_v19 = vld [vmem:[%s738_s23 + $0x10] sm:$0xff]  ;;  %v192_v20 = vld [vmem:[%s738_s23 + $0x18] sm:$0xff]  ;;  %v209_v24 = vld [vmem:[%s738_s23 + $0xa0] sm:$0xff] }
  0x1c   : > { %578 = vmatpush3.bf16.msra.mxu0 %v577_v9  ;;  %v223_v21 = vld [vmem:[%s738_s23 + $0x110] sm:$0xff]  ;;  %v581_v22 = vpack.c.bf16 %v192_v20, %v191_v19  ;;  %v224_v23 = vld [vmem:[%s738_s23 + $0x118] sm:$0xff]  ;;  %v210_v25 = vld [vmem:[%s738_s23 + $0xa8] sm:$0xff]  ;;  %v260_v14 = vsub.s32 %v257_v0, %v259_v1 }
  0x1d   : > { %610 = vmatpush3.bf16.msra.mxu1 %v609_v13  ;;  %580 = vmatprep.subr.bf16.mxu0 %v579_v17  ;;  %v613_v26 = vpack.c.bf16 %v224_v23, %v223_v21  ;;  %v583_v27 = vpack.c.bf16 %v210_v25, %v209_v24  ;;  %v241_v28 = vld [vmem:[%s738_s23 + $0x1a0] sm:$0xff]  ;;  %v242_v29 = vld [vmem:[%s738_s23 + $0x1a8] sm:$0xff]  ;;  %v211_v36 = vld [vmem:[%s738_s23 + $0xb0] sm:$0xff] }
  0x1e   : > { %612 = vmatprep.subr.bf16.mxu1 %v611_v18  ;;  %v193_v30 = vld [vmem:[%s738_s23 + $0x20] sm:$0xff]  ;;  %v615_v31 = vpack.c.bf16 %v242_v29, %v241_v28  ;;  %v194_v32 = vld [vmem:[%s738_s23 + $0x28] sm:$0xff]  ;;  %v212_v37 = vld [vmem:[%s738_s23 + $0xb8] sm:$0xff] }
  0x1f   : > { %v225_v33 = vld [vmem:[%s738_s23 + $0x120] sm:$0xff]  ;;  %v226_v34 = vld [vmem:[%s738_s23 + $0x128] sm:$0xff]  ;;  %v585_v35 = vpack.c.bf16 %v194_v32, %v193_v30  ;;  %v243_v38 = vld [vmem:[%s738_s23 + $0x1b0] sm:$0xff]  ;;  %v587_v40 = vpack.c.bf16 %v212_v37, %v211_v36 }
  0x20   : > { %582 = vmatpush3.bf16.msra.mxu0 %v581_v22  ;;  %v617_v39 = vpack.c.bf16 %v226_v34, %v225_v33  ;;  %v244_v41 = vld [vmem:[%s738_s23 + $0x1b8] sm:$0xff]  ;;  %v195_v42 = vld [vmem:[%s738_s23 + $0x30] sm:$0xff]  ;;  %v213_v47 = vld [vmem:[%s738_s23 + $0xc0] sm:$0xff] }
  0x21   : > { %614 = vmatpush3.bf16.msra.mxu1 %v613_v26  ;;  %584 = vmatprep.subr.bf16.mxu0 %v583_v27  ;;  %v196_v43 = vld [vmem:[%s738_s23 + $0x38] sm:$0xff]  ;;  %v619_v44 = vpack.c.bf16 %v244_v41, %v243_v38  ;;  %v227_v45 = vld [vmem:[%s738_s23 + $0x130] sm:$0xff]  ;;  %v214_v51 = vld [vmem:[%s738_s23 + $0xc8] sm:$0xff] }
  0x22   : > { %616 = vmatprep.subr.bf16.mxu1 %v615_v31  ;;  %v228_v46 = vld [vmem:[%s738_s23 + $0x138] sm:$0xff]  ;;  %v245_v52 = vld [vmem:[%s738_s23 + $0x1c0] sm:$0xff]  ;;  %v246_v53 = vld [vmem:[%s738_s23 + $0x1c8] sm:$0xff]  ;;  %v589_v54 = vpack.c.bf16 %v196_v43, %v195_v42  ;;  %v591_v56 = vpack.c.bf16 %v214_v51, %v213_v47 }
  0x23   : > { %v621_v55 = vpack.c.bf16 %v228_v46, %v227_v45  ;;  %v197_v57 = vld [vmem:[%s738_s23 + $0x40] sm:$0xff]  ;;  %v198_v58 = vld [vmem:[%s738_s23 + $0x48] sm:$0xff]  ;;  %v623_v60 = vpack.c.bf16 %v246_v53, %v245_v52  ;;  %v215_v62 = vld [vmem:[%s738_s23 + $0xd0] sm:$0xff] }
  0x24   : > { %586 = vmatpush3.bf16.msra.mxu0 %v585_v35  ;;  %v229_v59 = vld [vmem:[%s738_s23 + $0x140] sm:$0xff]  ;;  %v230_v61 = vld [vmem:[%s738_s23 + $0x148] sm:$0xff]  ;;  %v216_v63 = vld [vmem:[%s738_s23 + $0xd8] sm:$0xff]  ;;  %v593_v4 = vpack.c.bf16 %v198_v58, %v197_v57 }
  0x25   : > { %618 = vmatpush3.bf16.msra.mxu1 %v617_v39  ;;  %588 = vmatprep.subr.bf16.mxu0 %v587_v40  ;;  %v247_v2 = vld [vmem:[%s738_s23 + $0x1d0] sm:$0xff]  ;;  %v248_v3 = vld [vmem:[%s738_s23 + $0x1d8] sm:$0xff]  ;;  %v625_v5 = vpack.c.bf16 %v230_v61, %v229_v59  ;;  %v595_v6 = vpack.c.bf16 %v216_v63, %v215_v62  ;;  %v217_v12 = vld [vmem:[%s738_s23 + $0xe0] sm:$0xff] }
  0x26   : > { %620 = vmatprep.subr.bf16.mxu1 %v619_v44  ;;  %v199_v7 = vld [vmem:[%s738_s23 + $0x50] sm:$0xff]  ;;  %v200_v8 = vld [vmem:[%s738_s23 + $0x58] sm:$0xff]  ;;  %v627_v10 = vpack.c.bf16 %v248_v3, %v247_v2  ;;  %v218_v13 = vld [vmem:[%s738_s23 + $0xe8] sm:$0xff] }
  0x27   : > { %v231_v9 = vld [vmem:[%s738_s23 + $0x150] sm:$0xff]  ;;  %v232_v11 = vld [vmem:[%s738_s23 + $0x158] sm:$0xff]  ;;  %v249_v15 = vld [vmem:[%s738_s23 + $0x1e0] sm:$0xff]  ;;  %v597_v17 = vpack.c.bf16 %v200_v8, %v199_v7  ;;  %v599_v20 = vpack.c.bf16 %v218_v13, %v217_v12 }
  0x28   : > { %590 = vmatpush3.bf16.msra.mxu0 %v589_v54  ;;  %v250_v16 = vld [vmem:[%s738_s23 + $0x1e8] sm:$0xff]  ;;  %v201_v18 = vld [vmem:[%s738_s23 + $0x60] sm:$0xff]  ;;  %v629_v19 = vpack.c.bf16 %v232_v11, %v231_v9  ;;  %v219_v26 = vld [vmem:[%s738_s23 + $0xf0] sm:$0xff] }
  0x29   : > { %622 = vmatpush3.bf16.msra.mxu1 %v621_v55  ;;  %592 = vmatprep.subr.bf16.mxu0 %v591_v56  ;;  %v202_v21 = vld [vmem:[%s738_s23 + $0x68] sm:$0xff]  ;;  %v233_v22 = vld [vmem:[%s738_s23 + $0x160] sm:$0xff]  ;;  %v631_v24 = vpack.c.bf16 %v250_v16, %v249_v15  ;;  %v220_v27 = vld [vmem:[%s738_s23 + $0xf8] sm:$0xff] }
  0x2a   : > { %624 = vmatprep.subr.bf16.mxu1 %v623_v60  ;;  %v188_v23 = vld [vmem:[%s733_s19] sm:$0xff]  ;;  %v234_v25 = vld [vmem:[%s738_s23 + $0x168] sm:$0xff]  ;;  %v251_v30 = vld [vmem:[%s738_s23 + $0x1f0] sm:$0xff]  ;;  %v601_v32 = vpack.c.bf16 %v202_v21, %v201_v18  ;;  %v603_v36 = vpack.c.bf16 %v220_v27, %v219_v26 }
  0x2b   : > { %v261_v28 = vrot.slane %v188_v23, %v260_v14  ;;  %v254_v29 = vcombine.high %v188_v23, %v188_v23  ;;  %v252_v31 = vld [vmem:[%s738_s23 + $0x1f8] sm:$0xff]  ;;  %v633_v35 = vpack.c.bf16 %v234_v25, %v233_v22  ;;  %v203_v37 = vld [vmem:[%s738_s23 + $0x70] sm:$0xff]  ;;  %v500_v55 = vld [vmem:[%s838_s2] ss:$0 sm:$0xff] (!%p499_p6) }
  0x2c   : > { %594 = vmatpush3.bf16.msra.mxu0 %v593_v4  ;;  %v204_v38 = vld [vmem:[%s738_s23 + $0x78] sm:$0xff]  ;;  %v635_v39 = vpack.c.bf16 %v252_v31, %v251_v30  ;;  %v235_v40 = vld [vmem:[%s738_s23 + $0x170] sm:$0xff] }
  0x2d   : > { %626 = vmatpush3.bf16.msra.mxu1 %v625_v5  ;;  %596 = vmatprep.subr.bf16.mxu0 %v595_v6  ;;  %v269_v33 = vcombine.high %v261_v28, %v261_v28  ;;  %v268_v34 = vrot.slane %v254_v29, %v260_v14  ;;  %v236_v41 = vld [vmem:[%s738_s23 + $0x178] sm:$0xff]  ;;  %v605_v43 = vpack.c.bf16 %v204_v38, %v203_v37 }
  0x2e   : > { %628 = vmatprep.subr.bf16.mxu1 %v627_v10  ;;  %v637_v44 = vpack.c.bf16 %v236_v41, %v235_v40  ;;  %v187_v51 = vld [vmem:[#allocation2] sm:$0x3] }
  0x2f   : > { %339 = vmatprep.mubr.f32.mxu0 %v269_v33  ;;  %v270_v42 = vcombine.high %v268_v34, %v268_v34 }
  0x30   : > { %598 = vmatpush3.bf16.msra.mxu0 %v597_v17 }
  0x31   : > { %630 = vmatpush3.bf16.msra.mxu1 %v629_v19  ;;  %600 = vmatprep.subr.bf16.mxu0 %v599_v20 }
  0x32   : > { %632 = vmatprep.subr.bf16.mxu1 %v631_v24  ;;  %409 = vmatprep.mubr.f32.mxu1 %v270_v42 }
  0x34   : > { %602 = vmatpush3.bf16.msra.mxu0 %v601_v32 }
  0x35   : > { %634 = vmatpush3.bf16.msra.mxu1 %v633_v35  ;;  %604 = vmatprep.subr.bf16.mxu0 %v603_v36 }
  0x36   : > { %636 = vmatprep.subr.bf16.mxu1 %v635_v39 }
  0x38   : > { %606 = vmatpush3.bf16.msra.mxu0 %v605_v43 }
  0x39   : > { %638 = vmatpush3.bf16.msra.mxu1 %v637_v44 }
  0x3b   : > { %340 = vmatmul.mubr.f32.vlgmr.msra.gmra.mrb[0].mxu0 %v261_v28 }
  0x3c   : > { %410 = vmatmul.mubr.f32.vlgmr.msra.gmra.mrb[0].mxu1 %v268_v34 }
 0x10e   : > { %v537_v45 = vpop.f32.mrb[0].mxu0 }
 0x10f   : > { %v572_v46 = vpop.f32.mrb[0].mxu1  ;;  %v538_v47 = vpop.f32.mrb[1].mxu0 }
 0x110   : > { %v539_v48 = vadd.f32 %v538_v47, %v537_v45  ;;  %v573_v49 = vpop.f32.mrb[1].mxu1 }
 0x111   : > { %v574_v50 = vadd.f32 %v573_v49, %v572_v46  ;;  %421 = sbr.rel (%p499_p6) target bundleno = 290 (0x122), region = 40 }
 0x113   : > { %v412_v52 = vadd.f32 %v574_v50, %v539_v48 }
 0x115   : > { %v415_v53 = vadd.f32 %v412_v52, %v187_v51 }
 0x117   : > { %417 = vst.msk [vmem:[#allocation2] sm:$0x3] %vm416_vm1, %v415_v53 }
 0x11e   : > { %v422_v54 = vld [vmem:[#allocation2] sm:$0x3] }
 0x11f   : > { %v430_v56 = vadd.f32 %v500_v55, %v422_v54 }
 0x121   : > { %431 = vst.msk [vmem:[#allocation3] sm:$0x3] %vm416_vm1, %v430_v56 }
 0x122 PF: > { %p643_p7 = scmp.eq.s32.totalorder %s724_s13, 1  ;;  %s697_s26 = smov [#allocation3]  }
 0x123   : > { %s439_s27 = sshll.u32 %s697_s26, 4  ;;  %s440_s27 = int_to_ptr.vmem [resolvable:$true] %s439_s27 }
 0x124   : > { %s657_s28 = scalar_lea.vmem %s440_s27, 32  ;;  %p664_p11 = scmp.lt.s32.totalorder %s440_s27, %s440_s27 }
 0x125   : > { %p658_p8 = scmp.ne.s32.totalorder %s440_s27, %s657_s28  ;;  %p665_p12 = scmp.lt.s32.totalorder %s657_s28, %s657_s28 }
 0x127   : > { %p659_p9 = pnand %p658_p8, %p643_p7  ;;  %p666_p13 = por %p665_p12, %p664_p11 }
 0x129   : > { %p660_p10 = pneg %p659_p9 }
 0x12b   : > { %p667_p0 = pnand %p666_p13, %p660_p10 }
 0x12d   : > { %670 = shalt.err (!%p667_p0)
}
 0x12e   : > { %s671_s4 = scalar_lea.hbm %s839_s3, 32 }
 0x12f   : > { %p672_p1 = scmp.ne.s32.totalorder %s839_s3, %s671_s4  ;;  %p677_p4 = scmp.lt.u32.totalorder %s671_s4, %s839_s3 }
 0x131   : > { %p673_p2 = pnand %p672_p1, %p643_p7 }
 0x133   : > { %p674_p3 = pneg %p673_p2 }
 0x135   : > { %p679_p5 = pnand %p677_p4, %p674_p3 }
 0x137   : > { %682 = shalt.err (!%p679_p5)
}
 0x138   : > { %640 = dma.vmem_to_hbm [thread:$0]  (%p643_p7), %s440_s27, 32, %s839_s3, [#allocation4]  }
 0x139   : > { %688 = dma.done.wait (%p643_p7), [#allocation4], 32  }
 0x13a   : > { %690 = vsyncadd (%p643_p7), [#allocation4], 4294967264 }
 0x13b PF: > { %s14_s12 = sadd.s32 1, %s693_s12  }
 0x13c   : > { %p11_p6 = scmp.ge.s32.totalorder %s14_s12, 4  }
 0x13e   :  { %13 = sbr.rel (!%p11_p6) target bundleno = 1 (0x1), region = 70 }
 0x145   :  { %452 = vsyncpa [#allocation4], 1 }
 0x146   :  { %454 = vsyncpa [#allocation4 + $0x1], 1 }

// kernel: model_forward.2
= control target key start
LH: loop header
LB: loop body
LE: loop exit
PB: predicated region body
PF: predicated region fallthrough
CT: control target
= control target key end

     0   :  { %s2085_s21 = smov 0   ;;  %s2087_s22 = smov 0   ;;  %s2418_s0 = inlined_call_operand.vmem [shape: f32[2,16,64], index: 0, kind: input, shape index: {}]   ;;  %s2419_s1 = inlined_call_operand.vmem [shape: f32[1,64], index: 1, kind: input, shape index: {}]   ;;  %s2420_s2 = inlined_call_operand.vmem [shape: f32[1,64], index: 2, kind: input, shape index: {}]   ;;  %s2421_s3 = inlined_call_operand.vmem [shape: f32[64,320], index: 3, kind: input, shape index: {}]   ;;  %s2422_s4 = inlined_call_operand.vmem [shape: f32[1,320], index: 4, kind: input, shape index: {}]   ;;  %s2423_s5 = inlined_call_operand.vmem [shape: f32[2,64], index: 5, kind: input, shape index: {}]   ;;  %s2424_s6 = inlined_call_operand.vmem [shape: f32[2,64], index: 6, kind: input, shape index: {}]   ;;  %s2425_s7 = inlined_call_operand.vmem [shape: f32[128,64], index: 7, kind: input, shape index: {}]   ;;  %s2426_s8 = inlined_call_operand.vmem [shape: f32[1,64], index: 8, kind: input, shape index: {}]   ;;  %s2427_s9 = inlined_call_operand.vmem [shape: f32[16,64], index: 9, kind: input, shape index: {}]   ;;  %s2428_s10 = inlined_call_operand.vmem [shape: f32[16,64], index: 10, kind: input, shape index: {}]   ;;  %s2429_s11 = inlined_call_operand.vmem [shape: f32[64,64], index: 11, kind: input, shape index: {}]   ;;  %s2430_s12 = inlined_call_operand.vmem [shape: f32[16,16], index: 12, kind: input, shape index: {}]   ;;  %s2431_s13 = inlined_call_operand.vmem [shape: f32[16,64], index: 13, kind: input, shape index: {}]   ;;  %s2432_s14 = inlined_call_operand.vmem [shape: f32[16,64], index: 14, kind: input, shape index: {}]   ;;  %s2433_s15 = inlined_call_operand.vmem [shape: f32[16,16], index: 15, kind: input, shape index: {}]   ;;  %s2434_s16 = inlined_call_operand.vmem [shape: f32[2,16,64], index: 16, kind: output, shape index: {}]  }
   0x1   :  { %2435 = sst [smem:[#allocation5_spill]] %s2418_s0  ;;  %s2089_s23 = smov 0  }
   0x2   :  { %2436 = sst [smem:[#allocation6_spill]] %s2434_s16  ;;  %s2091_s24 = smov 0  }
   0x3   :  { %s2093_s25 = smov 0  }
   0x4 LB: > { %s35_s26 = sadd.s32 1, %s1988_s23  ;;  %s38_s27 = sadd.s32 1, %s1992_s24  ;;  %s1996_s25 = sphi %s2093_s25, %s26_s25   ;;  %s1992_s24 = sphi %s2091_s24, %s2446_s24   ;;  %s1988_s23 = sphi %s2089_s23, %s2445_s23   ;;  %s1984_s22 = sphi %s2087_s22, %s2444_s22   ;;  %s1980_s21 = sphi %s2085_s21, %s2443_s21  }
   0x5   : > { %p36_p0 = scmp.ge.s32.totalorder %s35_s26, 2  ;;  %p1563_p1 = scmp.ge.s32.totalorder %s1996_s25, 1 }
   0x6   : > { %p474_p2 = scmp.lt.s32.totalorder %s1996_s25, 5 }
   0x7   : > { %s2448_s26 = smov (%p36_p0, %s35_s26), 0  ;;  %s2450_s27 = smov (!%p36_p0, %s38_s27), %s1992_s24 }
   0x8   : > { %2437 = sst [smem:[#allocation3_spill]] %s2448_s26  ;;  %p475_p3 = pnand %p1563_p1, %p474_p2 }
   0x9   : > { %p40_p4 = scmp.ge.s32.totalorder %s2450_s27, 2  ;;  %p524_p5 = scmp.lt.s32.totalorder (!%p475_p3), %s1984_s22, 1 }
   0xa   : > { %478 = sbr.rel (%p475_p3) target bundleno = 1841 (0x731), region = 84  ;;  %s2439_s0 = sld [smem:[#allocation5_spill]] (!%p475_p3) }
   0xb   : > { %s2452_s27 = smov (%p40_p4, %s2450_s27), 0  ;;  %s2440_s16 = sld [smem:[#allocation6_spill]] (!%p475_p3) }
   0xc   : > { %2438 = sst [smem:[#allocation4_spill]] %s2452_s27  ;;  %p1568_p6 = scmp.ne.s32.totalorder (!%p475_p3), %s1980_s21, 0 }
  0x11   : > { %s2454_s22 = smov (!%p524_p5, %s1984_s22), 1  ;;  %538 = sbr.rel (%p1568_p6) target bundleno = 24 (0x18), region = 88 }
  0x12   : > { %s1603_s28 = sshll.u32 %s2454_s22, 4  ;;  %vm541_vm0 = vcmask (!%p1568_p6), 523264  }
  0x13   : > { %s528_s17 = scalar_lea.vmem %s2439_s0, %s1603_s28  ;;  %s2123_s20 = scalar_lea.vmem %s2440_s16, %s1603_s28 }
  0x14   : > { %v539_v0 = vld [vmem:[%s528_s17] sm:$0xff] (!%p1568_p6)  ;;  %v540_v1 = vld [vmem:[%s528_s17 + $0x8] sm:$0xff] (!%p1568_p6) }
  0x15   : > { %542 = vst.msk [vmem:[#allocation2] sm:$0xff] (!%p1568_p6), %vm541_vm0, %v539_v0  ;;  %543 = vst.msk [vmem:[#allocation2 + $0x8] sm:$0xff] (!%p1568_p6), %vm541_vm0, %v540_v1 }
  0x18 PF: > { %vm546_vm1 = vcmask 523264   ;;  %v610_v16 = vld [vmem:[%s2421_s3 + $0x8] sm:$0xff]  ;;  %v613_v17 = vld [vmem:[%s2421_s3 + $0x20] sm:$0xff]  ;;  %v612_v20 = vld [vmem:[%s2421_s3 + $0x18] sm:$0xff]  ;;  %v1998_v38 = vmov 0.0   ;;  %v594_v53 = vlaneseq  ;;  %vm1999_vm6 = vmmov 0  }
  0x19   : > { %v1772_v18 = vpack.c.bf16 %v613_v17, %v610_v16  ;;  %v609_v19 = vld [vmem:[%s2421_s3] sm:$0xff]  ;;  %v616_v22 = vld [vmem:[%s2421_s3 + $0x38] sm:$0xff]  ;;  %v619_v23 = vld [vmem:[%s2421_s3 + $0x50] sm:$0xff]  ;;  %720 = vmatprep.mubr.f32.mxu1 %v1998_v38  ;;  %vm1172_vm7 = vcmask 7168   ;;  %p1600_p7 = scmp.ne.s32.totalorder %s1980_s21, 1 }
  0x1a   : > { %v1774_v21 = vpack.c.bf16 %v612_v20, %v609_v19  ;;  %v1776_v24 = vpack.c.bf16 %v619_v23, %v616_v22  ;;  %v615_v25 = vld [vmem:[%s2421_s3 + $0x30] sm:$0xff]  ;;  %v618_v26 = vld [vmem:[%s2421_s3 + $0x48] sm:$0xff]  ;;  %v625_v29 = vld [vmem:[%s2421_s3 + $0x80] sm:$0xff]  ;;  %v2199_v58 = vshrl.u32 %v594_v53, 7 }
  0x1b   : > { %1773 = vmatprep.subr.bf16.mxu1 %v1772_v18  ;;  %v1778_v27 = vpack.c.bf16 %v618_v26, %v615_v25  ;;  %v622_v28 = vld [vmem:[%s2421_s3 + $0x68] sm:$0xff]  ;;  %v621_v31 = vld [vmem:[%s2421_s3 + $0x60] sm:$0xff]  ;;  %v624_v32 = vld [vmem:[%s2421_s3 + $0x78] sm:$0xff] }
  0x1c   : > { %v2126_v2 = vld [vmem:[#allocation2] sm:$0xff]  ;;  %v2128_v3 = vld [vmem:[#allocation2 + $0x8] sm:$0xff]  ;;  %1775 = vmatpush1.bf16.msra.mxu1 %v1774_v21  ;;  %v1780_v30 = vpack.c.bf16 %v625_v29, %v622_v28  ;;  %v1782_v34 = vpack.c.bf16 %v624_v32, %v621_v31  ;;  %v631_v35 = vld [vmem:[%s2421_s3 + $0xb0] sm:$0xff]  ;;  %vm596_vm2 = vcmp.lt.s32.totalorder %v2199_v58, 1 }
  0x1d   : > { %v547_v4 = vsel %vm546_vm1, %v2126_v2, 0.0  ;;  %v550_v5 = vsel %vm546_vm1, %v2128_v3, 0.0  ;;  %1777 = vmatprep.subr.bf16.mxu1 %v1776_v24  ;;  %v628_v33 = vld [vmem:[%s2421_s3 + $0x98] sm:$0xff]  ;;  %v627_v36 = vld [vmem:[%s2421_s3 + $0x90] sm:$0xff]  ;;  %v630_v37 = vld [vmem:[%s2421_s3 + $0xa8] sm:$0xff] }
  0x1e   : > { %548 = vadd.xlane.f32.xlu0 %v547_v4  ;;  %v1784_v39 = vpack.c.bf16 %v631_v35, %v628_v33  ;;  %v611_v40 = vld [vmem:[%s2421_s3 + $0x10] sm:$0xff]  ;;  %v614_v41 = vld [vmem:[%s2421_s3 + $0x28] sm:$0xff]  ;;  %v1786_v42 = vpack.c.bf16 %v630_v37, %v627_v36  ;;  %v1569_v51 = vld [vmem:[%s2419_s1] ss:$0 sm:$0xff]  ;;  %v637_v35 = vsub.s32 0, %v2199_v58  ;;  %v641_v37 = vsub.s32 1, %v2199_v58 }
  0x1f   : > { %v1788_v43 = vpack.c.bf16 %v614_v41, %v611_v40  ;;  %v1570_v56 = vld [vmem:[%s2420_s2] ss:$0 sm:$0xff]  ;;  %v626_v16 = vld [vmem:[%s2421_s3 + $0x88] sm:$0xff]  ;;  %v632_v21 = vld [vmem:[%s2421_s3 + $0xb8] sm:$0xff] }
  0x20   : > { %1779 = vmatpush1.bf16.msra.mxu1 %v1778_v27  ;;  %v599_v0 = vld [vmem:[%s2431_s13] sm:$0xff]  ;;  %v881_v24 = vld [vmem:[%s2429_s11 + $0x8] sm:$0xff]  ;;  %v882_v26 = vld [vmem:[%s2429_s11 + $0x10] sm:$0xff] }
  0x21   : > { %1781 = vmatprep.subr.bf16.mxu1 %v1780_v30  ;;  %v603_v1 = vld [vmem:[%s2432_s14] sm:$0xff]  ;;  %v883_v27 = vld [vmem:[%s2429_s11 + $0x18] sm:$0xff]  ;;  %v885_v30 = vld [vmem:[%s2429_s11 + $0x28] sm:$0xff] }
  0x22   : > { %551 = vadd.xlane.f32.xlu0 %v550_v5  ;;  %v617_v5 = vld [vmem:[%s2421_s3 + $0x40] sm:$0xff]  ;;  %v1808_v28 = vpack.c.bf16 %v883_v27, %v882_v26  ;;  %v886_v32 = vld [vmem:[%s2429_s11 + $0x30] sm:$0xff]  ;;  %v887_v33 = vld [vmem:[%s2429_s11 + $0x38] sm:$0xff] }
  0x23   : > { %v629_v20 = vld [vmem:[%s2421_s3 + $0xa0] sm:$0xff]  ;;  %vm1837_vm9 = vmpackc.low %vm1172_vm7, %vm1172_vm7 }
  0x24   : > { %1783 = vmatpush1.bf16.msra.mxu1 %v1782_v34  ;;  %v1800_v22 = vpack.c.bf16 %v632_v21, %v629_v20  ;;  %v880_v23 = vld [vmem:[%s2429_s11] sm:$0xff]  ;;  %v1816_v34 = vpack.c.bf16 %v887_v33, %v886_v32 }
  0x25   : > { %1785 = vmatprep.subr.bf16.mxu1 %v1784_v39  ;;  %v1804_v25 = vpack.c.bf16 %v881_v24, %v880_v23  ;;  %v884_v29 = vld [vmem:[%s2429_s11 + $0x20] sm:$0xff] }
  0x26   : > { %v1812_v31 = vpack.c.bf16 %v885_v30, %v884_v29  ;;  %v633_v36 = vld [vmem:[%s2422_s4] sm:$0x7] }
  0x27   : > { %1805 = vmatprep.subr.bf16.mxu0 %v1804_v25  ;;  %v638_v39 = vrot.slane %v633_v36, %v637_v35  ;;  %v642_v40 = vrot.slane %v633_v36, %v641_v37  ;;  %v851_v21 = vld [vmem:[%s2424_s6] sm:$0x3] }
  0x28   : > { %1787 = vmatpush1.bf16.msra.mxu1 %v1786_v42  ;;  %1807 = vmatpush3.bf16.msra.mxu0 %v1804_v25  ;;  %v873_v26 = vrot.slane %v851_v21, %v641_v37 }
  0x29   : > { %1789 = vmatprep.subr.bf16.mxu1 %v1788_v43  ;;  %1809 = vmatprep.subr.bf16.mxu0 %v1808_v28 }
  0x2c   : > { %1811 = vmatpush3.bf16.msra.mxu0 %v1808_v28 }
  0x2d   : > { %1813 = vmatprep.subr.bf16.mxu0 %v1812_v31 }
  0x30   : > { %1815 = vmatpush3.bf16.msra.mxu0 %v1812_v31 }
  0x31   : > { %1817 = vmatprep.subr.bf16.mxu0 %v1816_v34 }
  0x34   : > { %1819 = vmatpush3.bf16.msra.mxu0 %v1816_v34 }
  0x35   : > { %1718 = vmatprep.subr.bf16.mxu0 %v1998_v38 }
  0xab   : > { %v549_v6 = vpop.xlane.xlu0 %548 }
  0xac   : > { %v554_v7 = vmul.f32 0.015625, %v549_v6  ;;  %v620_v6 = vld [vmem:[%s2421_s3 + $0x58] sm:$0xff] }
  0xae   : > { %v556_v8 = vsub.f32 %v2126_v2, %v554_v7 }
  0xaf   : > { %v552_v9 = vpop.xlane.xlu0 %551 }
  0xb0   : > { %v555_v10 = vmul.f32 0.015625, %v552_v9  ;;  %v558_v11 = vmul.f32 %v556_v8, %v556_v8 }
  0xb2   : > { %v557_v12 = vsub.f32 %v2128_v3, %v555_v10  ;;  %v560_v13 = vsel %vm546_vm1, %v558_v11, 0.0  ;;  %v604_v11 = vld [vmem:[%s2432_s14 + $0x8] sm:$0xff] }
  0xb3   : > { %561 = vadd.xlane.f32.xlu1 %v560_v13  ;;  %v1792_v13 = vpack.c.bf16 %v620_v6, %v617_v5 }
  0xb4   : > { %v559_v14 = vmul.f32 %v557_v12, %v557_v12 }
  0xb6   : > { %v563_v15 = vsel %vm546_vm1, %v559_v14, 0.0 }
  0xb7   : > { %564 = vadd.xlane.f32.xlu1 %v563_v15  ;;  %v623_v15 = vld [vmem:[%s2421_s3 + $0x70] sm:$0xff] }
  0xb8   : > { %v1796_v19 = vpack.c.bf16 %v626_v16, %v623_v15 }
 0x140   : > { %v562_v44 = vpop.xlane.xlu1 %561 }
 0x141   : > { %v566_v45 = vmul.f32 0.015625, %v562_v44 }
 0x143   : > { %v568_v46 = vadd.f32 1e-05, %v566_v45 }
 0x144   : > { %v565_v47 = vpop.xlane.xlu1 %564 }
 0x145   : > { %1916 = vrsqrt.f32 %v568_v46  ;;  %v567_v48 = vmul.f32 0.015625, %v565_v47 }
 0x147   : > { %v569_v49 = vadd.f32 1e-05, %v567_v48 }
 0x149   : > { %1918 = vrsqrt.f32 %v569_v49 }
 0x14f   : > { %v1917_v50 = vpop.eup %1916 }
 0x150   : > { %v572_v52 = vmul.f32 %v1917_v50, %v556_v8  ;;  %v600_v8 = vld [vmem:[%s2431_s13 + $0x8] sm:$0xff] }
 0x152   : > { %v581_v54 = vmul.f32 %v1569_v51, %v572_v52 }
 0x153   : > { %v1919_v55 = vpop.eup %1918 }
 0x154   : > { %v573_v57 = vmul.f32 %v1919_v55, %v557_v12  ;;  %v590_v60 = vadd.f32 %v1570_v56, %v581_v54 }
 0x156   : > { %v582_v59 = vmul.f32 %v1569_v51, %v573_v57  ;;  %v592_v62 = vrot.slane %v590_v60, 7  ;;  %v605_v10 = vmul.f32 %v603_v1, %v590_v60  ;;  %v645_v51 = vsub.s32 2, %v2199_v58 }
 0x158   : > { %v591_v61 = vadd.f32 %v1570_v56, %v582_v59  ;;  %v646_v52 = vrot.slane %v633_v36, %v645_v51 }
 0x15a   : > { %v593_v63 = vrot.slane %v591_v61, 7  ;;  %v606_v17 = vmul.f32 %v604_v11, %v591_v61 }
 0x15c   : > { %v598_v4 = vsel %vm596_vm2, %v593_v63, %v592_v62  ;;  %v597_v7 = vsel %vm596_vm2, %v592_v62, %v593_v63  ;;  %vm1277_vm2 = vcmask 130048  }
 0x15d   : > { %v601_v9 = vmul.f32 %v599_v0, %v598_v4  ;;  %v602_v14 = vmul.f32 %v600_v8, %v597_v7 }
 0x15f   : > { %v607_v12 = vadd.f32 %v605_v10, %v601_v9  ;;  %v608_v18 = vadd.f32 %v606_v17, %v602_v14  ;;  %v850_v14 = vld [vmem:[%s2423_s5] sm:$0x3] }
 0x160   : > { %v867_v20 = vrot.slane %v850_v14, %v641_v37 }
 0x161   : > { %1571 = vmatmul.mubr.msk.f32.vlgmr.msra.gmra.mrb[0].mxu1 %vm546_vm1, %v607_v12 }
 0x162   : > { %1791 = vmatpush3.bf16.msra.mxu1 %v1788_v43  ;;  %726 = vmatprep.mubr.f32.mxu1 %v1998_v38 }
 0x163   : > { %1793 = vmatprep.subr.bf16.mxu1 %v1792_v13 }
 0x165   : > { %1572 = vmatmul.mubr.msk.f32.gmra.mrb[2].mxu1 %vm546_vm1, %v608_v18 }
 0x166   : > { %1795 = vmatpush3.bf16.msra.mxu1 %v1792_v13  ;;  %1677 = vmatprep.mubr.msk.f32.mxu1 %vm546_vm1, %v607_v12 }
 0x167   : > { %1797 = vmatprep.subr.bf16.mxu1 %v1796_v19 }
 0x16a   : > { %1799 = vmatpush3.bf16.msra.mxu1 %v1796_v19  ;;  %v855_v19 = vrot.slane %v850_v14, %v637_v35 }
 0x16b   : > { %1801 = vmatprep.subr.bf16.mxu1 %v1800_v22 }
 0x16e   : > { %1803 = vmatpush3.bf16.msra.mxu1 %v1800_v22 }
 0x16f   : > { %1821 = vmatprep.subr.bf16.mxu1 %v1804_v25 }
 0x171   : > { %1678 = vmatmul.mubr.msk.f32.vlgmr.msra.gmra.mrb[4].mxu1 %vm546_vm1, %v608_v18 }
 0x172   : > { %1823 = vmatpush3.bf16.msra.mxu1 %v1804_v25  ;;  %v861_v25 = vrot.slane %v851_v21, %v637_v35 }
 0x173   : > { %1825 = vmatprep.subr.bf16.mxu1 %v1808_v28 }
 0x176   : > { %1827 = vmatpush3.bf16.msra.mxu1 %v1808_v28 }
 0x177   : > { %1829 = vmatprep.subr.bf16.mxu1 %v1812_v31 }
 0x17a   : > { %1831 = vmatpush3.bf16.msra.mxu1 %v1812_v31 }
 0x17b   : > { %1833 = vmatprep.subr.bf16.mxu1 %v1816_v34 }
 0x17e   : > { %1835 = vmatpush3.bf16.msra.mxu1 %v1816_v34 }
 0x234   : > { %v722_v41 = vpop.f32.mrb[0].mxu1 }
 0x235   : > { %v723_v42 = vadd.f32 %v722_v41, %v638_v39  ;;  %v724_v43 = vpop.f32.mrb[1].mxu1 }
 0x236   : > { %v2267_v44 = vadd.f32 %v724_v43, %v642_v40 }
 0x237   : > { %v1575_v45 = vmul.f32 -1.442695, %v723_v42 }
 0x238   : > { %v728_v46 = vpop.f32.mrb[2].mxu1 }
 0x239   : > { %1920 = vpow2.f32 %v1575_v45  ;;  %v729_v47 = vadd.f32 %v728_v46, %v638_v39  ;;  %v730_v48 = vpop.f32.mrb[3].mxu1 }
 0x23a   : > { %v2269_v49 = vadd.f32 %v730_v48, %v642_v40 }
 0x23b   : > { %v1578_v50 = vmul.f32 -1.442695, %v729_v47 }
 0x23d   : > { %1922 = vpow2.f32 %v1578_v50 }
 0x243   : > { %v1921_v53 = vpop.eup %1920 }
 0x244   : > { %v826_v54 = vadd.f32 1.0, %v1921_v53  ;;  %v1679_v55 = vpop.f32.mrb[4].mxu1  ;;  %v877_v53 = vld [vmem:[%s2427_s9 + $0x8] sm:$0xff] }
 0x245   : > { %v805_v56 = vadd.f32 %v1679_v55, %v646_v52  ;;  %v799_v57 = vpop.f32.mrb[5].mxu1  ;;  %v876_v55 = vld [vmem:[%s2427_s9] sm:$0xff] }
 0x246   : > { %1924 = vrcp.f32 %v826_v54  ;;  %v800_v59 = vadd.f32 %v799_v57, %v646_v52  ;;  %v879_v54 = vld [vmem:[%s2428_s10 + $0x8] sm:$0xff] }
 0x247   : > { %v1923_v60 = vpop.eup %1922  ;;  %v1580_v61 = vmul.f32 -1.442695, %v805_v56 }
 0x248   : > { %v829_v62 = vadd.f32 1.0, %v1923_v60  ;;  %v1577_v63 = vmul.f32 -1.442695, %v800_v59 }
 0x249   : > { %1926 = vpow2.f32 %v1580_v61 }
 0x24a   : > { %1928 = vrcp.f32 %v829_v62 }
 0x24b   : > { %1930 = vpow2.f32 %v1577_v63 }
 0x250   : > { %v1925_v0 = vpop.eup %1924 }
 0x251   : > { %v844_v4 = vmul.f32 %v1925_v0, %v723_v42 }
 0x253   : > { %v1927_v1 = vpop.eup %1926  ;;  %v1286_v8 = vand.u32 2147483647, %v844_v4 }
 0x254   : > { %v1929_v5 = vpop.eup %1928  ;;  %v831_v58 = vadd.f32 1.0, %v1927_v1 }
 0x255   : > { %v847_v6 = vmul.f32 %v1929_v5, %v729_v47  ;;  %v1931_v7 = vpop.eup %1930 }
 0x256   : > { %1932 = vrcp.f32 %v831_v58  ;;  %v828_v10 = vadd.f32 1.0, %v1931_v7 }
 0x257   : > { %v1287_v9 = vand.u32 2147483647, %v847_v6 }
 0x258   : > { %1934 = vrcp.f32 %v828_v10 }
 0x259   : > { %v1288_v11 = vmax.f32.f32 %v1286_v8, %v1287_v9 }
 0x25b   : > { %v1289_v12 = vrot.slane %v1288_v11, 4 }
 0x25d   : > { %v1290_v13 = vmax.f32 %v1288_v11, %v1289_v12 }
 0x25f   : > { %v1291_v15 = vrot.slane %v1290_v13, 2 }
 0x260   : > { %v1933_v16 = vpop.eup %1932 }
 0x261   : > { %v1292_v17 = vmax.f32 %v1290_v13, %v1291_v15  ;;  %v849_v18 = vmul.f32 %v1933_v16, %v805_v56  ;;  %v878_v56 = vld [vmem:[%s2428_s10] sm:$0xff] }
 0x262   : > { %v1935_v22 = vpop.eup %1934 }
 0x263   : > { %v1293_v23 = vrot.slane %v1292_v17, 1  ;;  %v846_v24 = vmul.f32 %v1935_v22, %v800_v59  ;;  %v857_v28 = vmul.f32 %v855_v19, %v849_v18  ;;  %v869_v29 = vmul.f32 %v867_v20, %v849_v18 }
 0x265   : > { %v1294_v27 = vmax.f32 %v1292_v17, %v1293_v23  ;;  %v868_v30 = vmul.f32 %v867_v20, %v846_v24  ;;  %v856_v31 = vmul.f32 %v855_v19, %v846_v24  ;;  %v863_v36 = vadd.f32 %v861_v25, %v857_v28 }
 0x266   : > { %v875_v39 = vadd.f32 %v873_v26, %v869_v29 }
 0x267   : > { %v2278_v32 = vmul.f32 0.007874016, %v1294_v27  ;;  %v862_v33 = vadd.f32 %v861_v25, %v856_v31  ;;  %v874_v34 = vadd.f32 %v873_v26, %v868_v30  ;;  %v889_v60 = vmul.f32 %v877_v53, %v863_v36 }
 0x268   : > { %v976_v62 = vmul.f32 %v877_v53, %v875_v39 }
 0x269   : > { %vm1317_vm3 = vcmp.gt.f32.partialorder %v2278_v32, 0.0  ;;  %1696 = vmatprep.mubr.msk.f32.mxu0 %vm546_vm1, %v862_v33  ;;  %1715 = vmatprep.mubr.msk.f32.mxu1 %vm546_vm1, %v874_v34  ;;  %v975_v58 = vmul.f32 %v876_v55, %v874_v34 }
 0x26a   : > { %v1318_v40 = vsel %vm1317_vm3, %v2278_v32, 1.0  ;;  %1697 = vmatmul.mubr.msk.f32.vlgmr.msra.gmra.mrb[0].mxu0 %vm546_vm1, %v863_v36  ;;  %1716 = vmatmul.mubr.msk.f32.vlgmr.msra.gmra.mrb[6].mxu1 %vm546_vm1, %v875_v39 }
 0x26b   : > { %1936 = vrcp.f32 %v1318_v40  ;;  %1720 = vmatprep.mubr.msk.bf16.mxu0 %vm1999_vm6, %v1998_v38 }
 0x275   : > { %v1937_v35 = vpop.eup %1936 }
 0x276   : > { %v1321_v37 = vmul.f32 %v1937_v35, %v847_v6  ;;  %v1320_v41 = vmul.f32 %v1937_v35, %v844_v4  ;;  %v888_v4 = vmul.f32 %v876_v55, %v862_v33 }
 0x278   : > { %v1597_v42 = vclamps-f32 %v1321_v37, 127.0  ;;  %v1596_v43 = vclamps-f32 %v1320_v41, 127.0 }
 0x27a   : > { %vm1327_vm4 = vcmp.lt.f32.partialorder %v1597_v42, 0.0  ;;  %v1329_v45 = vceil.f32 %v1597_v42  ;;  %v1331_v46 = vfloor.f32 %v1597_v42  ;;  %vm1326_vm5 = vcmp.lt.f32.partialorder %v1596_v43, 0.0 }
 0x27b   : > { %v1328_v47 = vceil.f32 %v1596_v43  ;;  %v1330_v48 = vfloor.f32 %v1596_v43 }
 0x27c   : > { %v2286_v50 = vsel %vm1327_vm4, %v1329_v45, %v1331_v46 }
 0x27d   : > { %v2288_v51 = vsel %vm1326_vm5, %v1328_v47, %v1330_v48 }
 0x27e   : > { %v1334_v52 = vpack.c.bf16 %v2286_v50, %v2288_v51 }
 0x33d   : > { %v1698_v57 = vpop.f32.mrb[0].mxu0  ;;  %v1717_v59 = vpop.f32.mrb[6].mxu1 }
 0x33e   : > { %v972_v61 = vmul.f32 %v1698_v57, %v879_v54  ;;  %v1059_v63 = vmul.f32 %v1717_v59, %v879_v54  ;;  %v962_v0 = vpop.f32.mrb[1].mxu0  ;;  %v1049_v1 = vpop.f32.mrb[7].mxu1 }
 0x33f   : > { %v971_v5 = vmul.f32 %v962_v0, %v878_v56  ;;  %v1058_v6 = vmul.f32 %v1049_v1, %v878_v56 }
 0x340   : > { %v974_v7 = vadd.f32 %v972_v61, %v889_v60  ;;  %v1061_v8 = vadd.f32 %v1059_v63, %v976_v62 }
 0x341   : > { %v973_v9 = vadd.f32 %v971_v5, %v888_v4  ;;  %v1060_v10 = vadd.f32 %v1058_v6, %v975_v58  ;;  %v1262_v4 = vld [vmem:[%s2430_s12] sm:$0xff] }
 0x342   : > { %v1074_v11 = vand.u32 2147483647, %v1061_v8  ;;  %v1063_v14 = vand.u32 2147483647, %v974_v7 }
 0x343   : > { %v1073_v12 = vand.u32 2147483647, %v1060_v10  ;;  %v1062_v16 = vand.u32 2147483647, %v973_v9 }
 0x344   : > { %v1078_v13 = vsel %vm546_vm1, %v1074_v11, -inf  ;;  %v1067_v17 = vsel %vm546_vm1, %v1063_v14, -inf }
 0x345   : > { %1079 = vmax.xlane.f32.xlu1 %v1078_v13  ;;  %v1075_v15 = vsel %vm546_vm1, %v1073_v12, -inf  ;;  %v1064_v18 = vsel %vm546_vm1, %v1062_v16, -inf }
 0x346   : > { %1076 = vmax.xlane.f32.xlu0 %v1075_v15  ;;  %v1273_v15 = vld [vmem:[%s2433_s15] sm:$0xff] }
 0x349   : > { %1068 = vmax.xlane.f32.xlu1 %v1067_v17 }
 0x34a   : > { %1065 = vmax.xlane.f32.xlu0 %v1064_v18  ;;  %v1274_v18 = vld [vmem:[%s2433_s15 + $0x8] sm:$0xff] }
 0x3d2   : > { %v1080_v19 = vpop.xlane.xlu1 %1079 }
 0x3d3   : > { %v1082_v20 = vmul.f32 0.007874016, %v1080_v19  ;;  %v1077_v21 = vpop.xlane.xlu0 %1076 }
 0x3d4   : > { %v1081_v22 = vmul.f32 0.007874016, %v1077_v21 }
 0x3d5   : > { %vm1105_vm8 = vcmp.gt.f32.partialorder %v1082_v20, 0.0 }
 0x3d6   : > { %v1107_v23 = vsel %vm1105_vm8, %v1082_v20, 1.0  ;;  %vm1104_vm10 = vcmp.gt.f32.partialorder %v1081_v22, 0.0  ;;  %v1836_v24 = vpack.c.bf16 %v1082_v20, %v1081_v22  ;;  %v1069_v25 = vpop.xlane.xlu1 %1068 }
 0x3d7   : > { %1938 = vrcp.f32 %v1107_v23  ;;  %v1106_v26 = vsel %vm1104_vm10, %v1081_v22, 1.0  ;;  %v1072_v27 = vmul.f32 0.007874016, %v1069_v25  ;;  %v1066_v28 = vpop.xlane.xlu0 %1065  ;;  %v1386_v25 = vld [vmem:[%s2425_s7 + $0x8] sm:$0xff] }
 0x3d8   : > { %1940 = vrcp.f32 %v1106_v26  ;;  %v1071_v29 = vmul.f32 0.007874016, %v1066_v28  ;;  %1838 = vmatprep.subr.msk.bf16.mxu1 %vm1837_vm9, %v1836_v24  ;;  %v1387_v26 = vld [vmem:[%s2425_s7 + $0x10] sm:$0xff]  ;;  %v1388_v28 = vld [vmem:[%s2425_s7 + $0x18] sm:$0xff] }
 0x3d9   : > { %vm1084_vm11 = vcmp.gt.f32.partialorder %v1072_v27, 0.0  ;;  %1841 = vmatpush3.bf16.xpose.msk.msra.mxu1 %vm1837_vm9, %v1836_v24  ;;  %v1385_v24 = vld [vmem:[%s2425_s7] sm:$0xff] }
 0x3da   : > { %v1086_v30 = vsel %vm1084_vm11, %v1072_v27, 1.0  ;;  %vm1083_vm12 = vcmp.gt.f32.partialorder %v1071_v29, 0.0  ;;  %1728 = vmatprep.mubr.msk.f32.mxu1 %vm1172_vm7, %v1071_v29  ;;  %1731 = vmatprep.subr.bf16.mxu1 %v1998_v38 }
 0x3db   : > { %1942 = vrcp.f32 %v1086_v30  ;;  %v1085_v31 = vsel %vm1083_vm12, %v1071_v29, 1.0  ;;  %v1846_v29 = vpack.c.bf16 %v1388_v28, %v1387_v26  ;;  %v1389_v30 = vld [vmem:[%s2425_s7 + $0x20] sm:$0xff] }
 0x3dc   : > { %1944 = vrcp.f32 %v1085_v31  ;;  %v1390_v31 = vld [vmem:[%s2425_s7 + $0x28] sm:$0xff]  ;;  %v1599_v28 = vld [vmem:[%s2426_s8] ss:$0 sm:$0xff] }
 0x3e0   : > { %1729 = vmatmul.mubr.msk.f32.vlgmr.msra.gmra.mrb[8].mxu1 %vm1172_vm7, %v1072_v27  ;;  %v1842_v27 = vpack.c.bf16 %v1386_v25, %v1385_v24 }
 0x3e1   : > { %v1939_v33 = vpop.eup %1938  ;;  %1732 = vmatpush3.bf16.msra.mxu1 %v1334_v52  ;;  %1733 = vmatprep.mubr.msk.bf16.mxu1 %vm1999_vm6, %v1998_v38 }
 0x3e2   : > { %v1941_v34 = vpop.eup %1940  ;;  %v1111_v36 = vmul.f32 %v1939_v33, %v1061_v8  ;;  %v1850_v33 = vpack.c.bf16 %v1390_v31, %v1389_v30 }
 0x3e3   : > { %v1109_v39 = vmul.f32 %v1941_v34, %v1060_v10  ;;  %v1391_v34 = vld [vmem:[%s2425_s7 + $0x30] sm:$0xff] }
 0x3e4   : > { %v1588_v40 = vclamps-f32 %v1111_v36, 127.0  ;;  %v1392_v36 = vld [vmem:[%s2425_s7 + $0x38] sm:$0xff] }
 0x3e5   : > { %v1943_v35 = vpop.eup %1942  ;;  %v1587_v37 = vclamps-f32 %v1109_v39, 127.0  ;;  %v1854_v39 = vpack.c.bf16 %v1392_v36, %v1391_v34 }
 0x3e6   : > { %v1945_v41 = vpop.eup %1944  ;;  %v1090_v42 = vmul.f32 %v1943_v35, %v974_v7  ;;  %vm1117_vm13 = vcmp.lt.f32.partialorder %v1588_v40, 0.0  ;;  %v1119_v43 = vceil.f32 %v1588_v40  ;;  %v1121_v45 = vfloor.f32 %v1588_v40  ;;  %v1263_v7 = vld [vmem:[%s2430_s12 + $0x8] sm:$0xff]  ;;  %v1393_v40 = vld [vmem:[%s2425_s7 + $0x40] sm:$0xff] }
 0x3e7   : > { %v1088_v46 = vmul.f32 %v1945_v41, %v973_v9  ;;  %vm1116_vm14 = vcmp.lt.f32.partialorder %v1587_v37, 0.0  ;;  %v1118_v47 = vceil.f32 %v1587_v37  ;;  %v1120_v48 = vfloor.f32 %v1587_v37  ;;  %v1394_v35 = vld [vmem:[%s2425_s7 + $0x48] sm:$0xff]  ;;  %v1395_v41 = vld [vmem:[%s2425_s7 + $0x50] sm:$0xff] }
 0x3e8   : > { %v1586_v50 = vclamps-f32 %v1090_v42, 127.0  ;;  %v1123_v51 = vsel %vm1117_vm13, %v1119_v43, %v1121_v45  ;;  %v1858_v37 = vpack.c.bf16 %v1394_v35, %v1393_v40  ;;  %v1396_v42 = vld [vmem:[%s2425_s7 + $0x58] sm:$0xff]  ;;  %v1397_v45 = vld [vmem:[%s2425_s7 + $0x60] sm:$0xff] }
 0x3e9   : > { %v1585_v52 = vclamps-f32 %v1088_v46, 127.0  ;;  %v1122_v53 = vsel %vm1116_vm14, %v1118_v47, %v1120_v48  ;;  %v1862_v43 = vpack.c.bf16 %v1396_v42, %v1395_v41  ;;  %v1398_v46 = vld [vmem:[%s2425_s7 + $0x68] sm:$0xff] }
 0x3ea   : > { %v1124_v38 = vpack.c.bf16 %v1123_v51, %v1122_v53  ;;  %v1098_v55 = vceil.f32 %v1586_v50  ;;  %v1100_v57 = vfloor.f32 %v1586_v50  ;;  %vm1096_vm0 = vcmp.lt.f32.partialorder %v1586_v50, 0.0 }
 0x3eb   : > { %v1097_v54 = vceil.f32 %v1585_v52  ;;  %v1099_v56 = vfloor.f32 %v1585_v52  ;;  %vm1095_vm15 = vcmp.lt.f32.partialorder %v1585_v52, 0.0  ;;  %v1866_v47 = vpack.c.bf16 %v1398_v46, %v1397_v45 }
 0x3ec   : > { %v1129_v59 = vsel %vm546_vm1, %v1124_v38, 0  ;;  %v1102_v61 = vsel %vm1096_vm0, %v1098_v55, %v1100_v57 }
 0x3ed   : > { %1719 = vmatpush3.bf16.xpose.msra.mxu0 %v1129_v59  ;;  %v1101_v60 = vsel %vm1095_vm15, %v1097_v54, %v1099_v56 }
 0x3ee   : > { %v1103_v62 = vpack.c.bf16 %v1102_v61, %v1101_v60  ;;  %1843 = vmatprep.subr.bf16.mxu0 %v1842_v27 }
 0x3f4   : > { %1721 = vmatmul.mubr.msk.bf16.vlgmr.msra.gmra.mrb[4].mxu0 %vm546_vm1, %v1103_v62 }
 0x3f5   : > { %1845 = vmatpush3.bf16.msra.mxu0 %v1842_v27 }
 0x3f6   : > { %1847 = vmatprep.subr.bf16.mxu0 %v1846_v29 }
 0x3f9   : > { %1849 = vmatpush3.bf16.msra.mxu0 %v1846_v29 }
 0x3fa   : > { %1851 = vmatprep.subr.bf16.mxu0 %v1850_v33 }
 0x3fd   : > { %1853 = vmatpush3.bf16.msra.mxu0 %v1850_v33 }
 0x3fe   : > { %1855 = vmatprep.subr.bf16.mxu0 %v1854_v39 }
 0x401   : > { %1857 = vmatpush3.bf16.msra.mxu0 %v1854_v39 }
 0x402   : > { %1859 = vmatprep.subr.bf16.mxu0 %v1858_v37 }
 0x405   : > { %1861 = vmatpush3.bf16.msra.mxu0 %v1858_v37 }
 0x406   : > { %1863 = vmatprep.subr.bf16.mxu0 %v1862_v43 }
 0x409   : > { %1865 = vmatpush3.bf16.msra.mxu0 %v1862_v43 }
 0x40a   : > { %1867 = vmatprep.subr.bf16.mxu0 %v1866_v47 }
 0x40d   : > { %1869 = vmatpush3.bf16.msra.mxu0 %v1866_v47 }
 0x4b3   : > { %v1730_v63 = vpop.f32.mrb[8].mxu1 }
 0x4b4   : > { %v1251_v0 = vpop.f32.mrb[9].mxu1 }
 0x4c7   : > { %v1165_v1 = vpop.f32.mrb[4].mxu0 }
 0x4c8   : > { %v1260_v5 = vmul.f32 %v1251_v0, %v1165_v1  ;;  %v1722_v58 = vpop.f32.mrb[5].mxu0 }
 0x4c9   : > { %v1168_v6 = vpop.f32.mrb[6].mxu0  ;;  %v1399_v58 = vld [vmem:[%s2425_s7 + $0x70] sm:$0xff] }
 0x4ca   : > { %v1264_v8 = vadd.f32 %v1262_v4, %v1260_v5  ;;  %v1261_v9 = vmul.f32 %v1730_v63, %v1168_v6  ;;  %v1723_v10 = vpop.f32.mrb[7].mxu0  ;;  %v1400_v6 = vld [vmem:[%s2425_s7 + $0x78] sm:$0xff] }
 0x4cc   : > { %v1267_v11 = vmul.f32 0.0625, %v1264_v8  ;;  %v1265_v12 = vadd.f32 %v1263_v7, %v1261_v9  ;;  %v1870_v7 = vpack.c.bf16 %v1400_v6, %v1399_v58  ;;  %v1576_v8 = vmul.f32 -1.442695, %v2267_v44 }
 0x4cd   : > { %v1579_v9 = vmul.f32 -1.442695, %v2269_v49 }
 0x4ce   : > { %v1269_v13 = vmax.f32 %v1267_v11, 0.0  ;;  %v1268_v14 = vmul.f32 0.0625, %v1265_v12  ;;  %1871 = vmatprep.subr.bf16.mxu0 %v1870_v7 }
 0x4cf   : > { %1873 = vmatpush3.bf16.msra.mxu0 %v1870_v7 }
 0x4d0   : > { %v1271_v16 = vmul.f32 %v1269_v13, %v1269_v13  ;;  %v1270_v17 = vmax.f32 %v1268_v14, 0.0 }
 0x4d2   : > { %v1272_v19 = vmul.f32 %v1270_v17, %v1270_v17  ;;  %v1275_v20 = vmul.f32 %v1273_v15, %v1271_v16 }
 0x4d4   : > { %v1278_v21 = vsel %vm1277_vm2, %v1275_v20, -inf  ;;  %v1276_v22 = vmul.f32 %v1274_v18, %v1272_v19 }
 0x4d5   : > { %1279 = vmax.xlane.f32.xlu0 %v1278_v21 }
 0x4d6   : > { %v1281_v23 = vsel %vm1277_vm2, %v1276_v22, -inf }
 0x4d7   : > { %1282 = vmax.xlane.f32.xlu1 %v1281_v23 }
 0x562   : > { %v1280_v48 = vpop.xlane.xlu0 %1279 }
 0x563   : > { %v1284_v50 = vmul.f32 0.007874016, %v1280_v48 }
 0x564   : > { %v1283_v51 = vpop.xlane.xlu1 %1282 }
 0x565   : > { %vm1296_vm3 = vcmp.gt.f32.partialorder %v1284_v50, 0.0  ;;  %v1285_v52 = vmul.f32 0.007874016, %v1283_v51  ;;  %v1379_v15 = vmul.f32 %v2278_v32, %v1284_v50 }
 0x566   : > { %v1298_v53 = vsel %vm1296_vm3, %v1284_v50, 1.0 }
 0x567   : > { %1946 = vrcp.f32 %v1298_v53  ;;  %vm1297_vm4 = vcmp.gt.f32.partialorder %v1285_v52, 0.0  ;;  %v1380_v21 = vmul.f32 %v2278_v32, %v1285_v52 }
 0x568   : > { %v1299_v38 = vsel %vm1297_vm4, %v1285_v52, 1.0 }
 0x569   : > { %1948 = vrcp.f32 %v1299_v38 }
 0x56a   : > { %1950 = vpow2.f32 %v1576_v8 }
 0x56b   : > { %1952 = vpow2.f32 %v1579_v9 }
 0x571   : > { %v1947_v54 = vpop.eup %1946 }
 0x572   : > { %v1301_v55 = vmul.f32 %v1947_v54, %v1275_v20 }
 0x573   : > { %v1949_v56 = vpop.eup %1948 }
 0x574   : > { %v1594_v57 = vclamps-f32 %v1301_v55, 127.0  ;;  %v1303_v59 = vmul.f32 %v1949_v56, %v1276_v22  ;;  %v1951_v10 = vpop.eup %1950 }
 0x575   : > { %v1953_v11 = vpop.eup %1952  ;;  %v827_v12 = vadd.f32 1.0, %v1951_v10 }
 0x576   : > { %v1595_v60 = vclamps-f32 %v1303_v59, 127.0  ;;  %v1310_v61 = vceil.f32 %v1594_v57  ;;  %v1312_v62 = vfloor.f32 %v1594_v57  ;;  %vm1308_vm5 = vcmp.lt.f32.partialorder %v1594_v57, 0.0 }
 0x577   : > { %v830_v13 = vadd.f32 1.0, %v1953_v11  ;;  %1954 = vrcp.f32 %v827_v12 }
 0x578   : > { %vm1309_vm6 = vcmp.lt.f32.partialorder %v1595_v60, 0.0  ;;  %v1311_v63 = vceil.f32 %v1595_v60  ;;  %v1313_v0 = vfloor.f32 %v1595_v60  ;;  %v1314_v1 = vsel %vm1308_vm5, %v1310_v61, %v1312_v62 }
 0x579   : > { %1956 = vrcp.f32 %v830_v13 }
 0x57a   : > { %v1315_v4 = vsel %vm1309_vm6, %v1311_v63, %v1313_v0 }
 0x57b   : > { %v1316_v5 = vpack.c.bf16 %v1315_v4, %v1314_v1 }
 0x57d   : > { %1734 = vmatmul.mubr.msk.bf16.vlgmr.msra.gmra.mrb[12].mxu1 %vm1277_vm2, %v1316_v5 }
 0x581   : > { %v1955_v14 = vpop.eup %1954 }
 0x582   : > { %v845_v18 = vmul.f32 %v1955_v14, %v2267_v44 }
 0x583   : > { %v1957_v16 = vpop.eup %1956 }
 0x584   : > { %v848_v23 = vmul.f32 %v1957_v16, %v2269_v49 }
 0x650   : > { %v1372_v17 = vpop.f32.mrb[12].mxu1 }
 0x651   : > { %v1381_v19 = vmul.f32 %v1379_v15, %v1372_v17  ;;  %v1735_v20 = vpop.f32.mrb[13].mxu1 }
 0x652   : > { %v1375_v22 = vpop.f32.mrb[14].mxu1 }
 0x653   : > { %v1383_v24 = vmul.f32 %v1381_v19, %v845_v18  ;;  %v1382_v25 = vmul.f32 %v1380_v21, %v1375_v22  ;;  %v1736_v26 = vpop.f32.mrb[15].mxu1 }
 0x655   : > { %v1384_v27 = vmul.f32 %v1382_v25, %v848_v23  ;;  %1769 = vmatprep.mubr.f32.mxu0 %v1383_v24 }
 0x657   : > { %1770 = vmatmul.mubr.f32.vlgmr.msra.gmra.mrb[2].mxu0 %v1384_v27 }
 0x72a   : > { %v1771_v29 = vpop.f32.mrb[2].mxu0  ;;  %1490 = sbr.rel (%p1600_p7) target bundleno = 1841 (0x731), region = 92 }
 0x72b   : > { %v1480_v30 = vadd.f32 %v1771_v29, %v1599_v28  ;;  %v1474_v44 = vpop.f32.mrb[3].mxu0 }
 0x72c   : > { %v1475_v31 = vadd.f32 %v1599_v28, %v1474_v44 }
 0x72d   : > { %v1484_v33 = vadd.f32 %v1480_v30, %v2128_v3 }
 0x72e   : > { %v1483_v32 = vadd.f32 %v1475_v31, %v2126_v2 }
 0x72f   : > { %1486 = vst.msk [vmem:[#allocation2 + $0x8] sm:$0xff] %vm546_vm1, %v1484_v33  ;;  %1492 = vst.msk [vmem:[%s2123_s20 + $0x8] sm:$0xff] (!%p1600_p7), %vm546_vm1, %v1484_v33 }
 0x730   : > { %1485 = vst.msk [vmem:[#allocation2] sm:$0xff] %vm546_vm1, %v1483_v32  ;;  %1491 = vst.msk [vmem:[%s2123_s20] sm:$0xff] (!%p1600_p7), %vm546_vm1, %v1483_v32 }
 0x731 PF: > { %s26_s25 = sadd.s32 1, %s1996_s25   ;;  %s2441_s29 = sld [smem:[#allocation3_spill]] }
 0x732   : > { %p23_p8 = scmp.ge.s32.totalorder %s26_s25, 6   ;;  %s2442_s30 = sld [smem:[#allocation4_spill]] }
 0x733   : > { %s2443_s21 = smov %s1988_s23  ;;  %s2444_s22 = smov %s1992_s24 }
 0x734   :  { %25 = sbr.rel (!%p23_p8) target bundleno = 4 (0x4), region = 122 }
 0x737   : > { %s2445_s23 = smov %s2441_s29 }
 0x738   : > { %s2446_s24 = smov %s2442_s30 }

</bundles_post_ra>
